<compile_context>
chip_gen: v5e
topology: v5e:2x2
jax: 0.10.0
libtpu: 0.0.40
codegen_flags: <defaults>
</compile_context>

<pallas_src>
import functools
import math

import jax
import jax.numpy as jnp
from jax.experimental import pallas as pl
from jax.experimental.pallas import tpu as pltpu

_MiB = 1024 * 1024


def _round_up(x: int, m: int) -> int:
    return ((x + m - 1) // m) * m


def _vmem_capacity_bytes() -> int:
    """Physical VMEM per core (64 MiB on v7x, 128 MiB on v5e/v6e)."""
    try:
        cap = getattr(pltpu.get_tpu_info(), "vmem_capacity_bytes", None)
        if cap:
            return int(cap)
    except Exception:
        pass
    return 128 * _MiB


def _const_spec(block_shape, dtype):
    """BlockSpec for a grid-invariant (constant index_map) operand.

    Large constants (weights at real model sizes) are single-buffered via
    pipeline_mode=pl.Buffered(1) to reclaim VMEM for a bigger node tile; tiny
    blocks keep the default double-buffered path (saving is irrelevant there
    and the default path is maximally robust)."""
    index_map = lambda i: (0,) * len(block_shape)
    nbytes = math.prod(block_shape) * jnp.dtype(dtype).itemsize
    if nbytes >= 1 * _MiB and hasattr(pl, "Buffered"):
        try:
            return pl.BlockSpec(block_shape, index_map,
                                pipeline_mode=pl.Buffered(1))
        except TypeError:  # older BlockSpec signature without pipeline_mode
            pass
    return pl.BlockSpec(block_shape, index_map)


def _gru_kernel(x_ref, len_ref, w_ih_ref, w_hh_ref, gib_ref, bhn_ref,
                out_ref, gi_ref, *, seq_len: int, unroll):
    """One grid step = full GRU over time for one tile of nodes.

    x_ref   : [T, tile_n, Dp]   bf16  time-major inputs (zero padded in n, D)
    len_ref : [tile_n, 1]       i32   per-node sequence lengths
    w_ih_ref: [Dp, 3Hp]         bf16  input weights  (gate order r|z|n)
    w_hh_ref: [Hp, 3Hp]         bf16  hidden weights (gate order r|z|n)
    gib_ref : [1, 3Hp]          f32   b_ih with b_hh folded in for r,z gates
    bhn_ref : [1, Hp]           f32   b_hh of the n gate (stays inside r*(..))
    out_ref : [tile_n, Hp]      f32   final hidden state
    gi_ref  : [T, tile_n, 3Hp]  bf16  scratch: hoisted input projection
    """
    tile_n, Hp = out_ref.shape

    # ---- Phase 1: hoisted input projection, one MXU matmul per timestep ----
    # Per-t chunking avoids a gi-sized f32 temporary next to the bf16 scratch
    # while every matmul stays full MXU row width ([tile_n, Dp] @ [Dp, 3Hp]).
    def proj(t, carry):
        gi_t = jnp.dot(x_ref[t], w_ih_ref[...],
                       preferred_element_type=jnp.float32)
        gi_ref[t] = (gi_t + gib_ref[...]).astype(gi_ref.dtype)
        return carry

    jax.lax.fori_loop(0, seq_len, proj, 0, unroll=unroll)

    # ---- Phase 2: sequential recurrence (only h @ W_hh is serial) ----------
    len_v = len_ref[...]                         # [tile_n, 1] i32
    b_hn = bhn_ref[...]                          # [1, Hp] f32 (implicit bcast)

    def step(t, h):
        gi_t = gi_ref[t]                         # [tile_n, 3Hp] bf16
        gh = jnp.dot(h.astype(jnp.bfloat16), w_hh_ref[...],
                     preferred_element_type=jnp.float32)
        r = jax.nn.sigmoid(gi_t[:, :Hp] + gh[:, :Hp])
        z = jax.nn.sigmoid(gi_t[:, Hp:2 * Hp] + gh[:, Hp:2 * Hp])
        n = jnp.tanh(gi_t[:, 2 * Hp:] + r * (gh[:, 2 * Hp:] + b_hn))
        h_new = n + z * (h - n)                  # == (1-z)*n + z*h, 1 VPU op less
        # pack_padded_sequence semantics: freeze h once t >= length(node).
        return jnp.where(t < len_v, h_new, h)

    h0 = jnp.zeros((tile_n, Hp), jnp.float32)
    h_final = jax.lax.fori_loop(0, seq_len, step, h0, unroll=unroll)
    out_ref[...] = h_final


@functools.partial(jax.jit, static_argnames=("pad_idx",))
def rnn_layer_forward(subtokens_embed, node_ids, params, pad_idx):
    """subtokens_embed: [N,T,D] f32; node_ids: [N,T] i32;
    params = (w_ih [3H,D], w_hh [3H,H], b_ih [3H], b_hh [3H]) (PyTorch GRU
    layout, gate order r,z,n).  Returns node_embedding [N,H] f32."""
    N, T, D = subtokens_embed.shape
    w_ih, w_hh, b_ih, b_hh = params
    H = w_hh.shape[1]

    # --- sequence lengths from the first pad position (torch.max trick) -----
    # NOTE: assumes padding is strictly trailing (as produced by pad_sequence);
    # interior pad ids would truncate.  Zero-length nodes yield h = 0 instead
    # of raising like pack_padded_sequence would (intentional).
    is_pad = node_ids == pad_idx
    has_pad = jnp.any(is_pad, axis=1)
    lengths = jnp.where(has_pad, jnp.argmax(is_pad, axis=1), T).astype(jnp.int32)

    # --- padded sizes: H -> lanes; D -> sublanes only; T NOT padded ---------
    Hp = _round_up(H, 128)
    Dp = _round_up(D, 8)      # x's last block dim equals the full array dim,
                              # so no 128-padding of D is needed.

    # --- generation-aware VMEM budget ----------------------------------------
    cap = _vmem_capacity_bytes()                        # 64 MiB v7x, 128 MiB v5e/v6e
    vmem_limit = min(cap - 12 * _MiB, int(cap * 0.84))  # ~52 MiB v7x, ~107 MiB v5e/v6e

    # constant operands, budgeted at worst-case double buffering
    const_bytes = 2 * ((Dp + Hp) * 3 * Hp * 2 + 4 * Hp * 4)
    tile_budget = max(4 * _MiB, vmem_limit - const_bytes - 6 * _MiB)

    bytes_per_node = (2 * T * Dp * 2        # x block (bf16, double buffered)
                      + T * 3 * Hp * 2      # gi scratch (bf16)
                      + 2 * Hp * 4          # out block (f32, double buffered)
                      + 16 * Hp * 4)        # recurrence temporaries (slack)
    tile_n = int(max(16, min(256, (tile_budget // bytes_per_node) // 16 * 16)))
    tile_n = min(tile_n, _round_up(N, 16))
    if N >= 32:
        # keep >= 2 node tiles so megacore / both v7x TensorCores get work
        tile_n = min(tile_n, _round_up(-(-N // 2), 16))
    Np = _round_up(N, tile_n)

    # --- pack parameters (per-gate zero padding keeps padded h columns == 0) -
    def pack_w(w, in_dim, in_dim_p):            # [3H, in_dim] -> [in_dim_p, 3Hp]
        gates = jnp.split(w.astype(jnp.float32), 3, axis=0)
        cols = [jnp.pad(g.T, ((0, in_dim_p - in_dim), (0, Hp - H))) for g in gates]
        return jnp.concatenate(cols, axis=1).astype(jnp.bfloat16)

    w_ih_p = pack_w(w_ih, D, Dp)                # [Dp, 3Hp] bf16
    w_hh_p = pack_w(w_hh, H, Hp)                # [Hp, 3Hp] bf16

    b_ih_r, b_ih_z, b_ih_n = jnp.split(b_ih.astype(jnp.float32), 3)
    b_hh_r, b_hh_z, b_hh_n = jnp.split(b_hh.astype(jnp.float32), 3)
    pad_h = lambda v: jnp.pad(v, (0, Hp - H))
    gi_bias = jnp.concatenate(
        [pad_h(b_ih_r + b_hh_r), pad_h(b_ih_z + b_hh_z), pad_h(b_ih_n)]
    )[None, :]                                  # [1, 3Hp] f32
    b_hn = pad_h(b_hh_n)[None, :]               # [1, Hp]  f32

    # --- inputs: cast + pad (node & D only, no T padding) + time-major ------
    x = jnp.pad(subtokens_embed.astype(jnp.bfloat16),
                ((0, Np - N), (0, 0), (0, Dp - D)))
    x_tm = jnp.transpose(x, (1, 0, 2))          # [T, Np, Dp]
    len_col = jnp.pad(lengths, (0, Np - N)).reshape(Np, 1)   # padded nodes: len 0

    unroll = True if T <= 8 else 4              # partial unroll for long seqs
    kernel = functools.partial(_gru_kernel, seq_len=T, unroll=unroll)

    out = pl.pallas_call(
        kernel,
        out_shape=jax.ShapeDtypeStruct((Np, Hp), jnp.float32),
        grid_spec=pltpu.PrefetchScalarGridSpec(
            num_scalar_prefetch=0,
            grid=(Np // tile_n,),               # one grid step per node tile
            in_specs=[
                pl.BlockSpec((T, tile_n, Dp), lambda i: (0, i, 0)),   # x
                pl.BlockSpec((tile_n, 1), lambda i: (i, 0)),          # lengths
                _const_spec((Dp, 3 * Hp), jnp.bfloat16),              # W_ih
                _const_spec((Hp, 3 * Hp), jnp.bfloat16),              # W_hh
                _const_spec((1, 3 * Hp), jnp.float32),                # gi bias
                _const_spec((1, Hp), jnp.float32),                    # b_hh_n
            ],
            out_specs=pl.BlockSpec((tile_n, Hp), lambda i: (i, 0)),
            scratch_shapes=[pltpu.VMEM((T, tile_n, 3 * Hp), jnp.bfloat16)],
        ),
        compiler_params=pltpu.CompilerParams(
            dimension_semantics=("parallel",),  # megacore-shard node tiles
            vmem_limit_bytes=int(vmem_limit),
        ),
    )(x_tm, len_col, w_ih_p, w_hh_p, gi_bias, b_hn)

    # h_n.sum(dim=0) == identity for num_layers=1, unidirectional; the torch
    # sort / unsort from pack_padded_sequence cancels.
    return out[:N, :H]


def _reference(subtokens_embed, node_ids, params, pad_idx,
               match_kernel_precision=False):
    """Pure-JAX GRU reference (lax.scan).  With match_kernel_precision=True it
    mirrors the kernel's arithmetic (bf16 MXU operands, bf16-stored gi, f32
    state); otherwise it is a plain f32 GRU."""
    w_ih, w_hh, b_ih, b_hh = params
    N, T, D = subtokens_embed.shape
    H = w_hh.shape[1]
    is_pad = node_ids == pad_idx
    lengths = jnp.where(jnp.any(is_pad, axis=1), jnp.argmax(is_pad, axis=1), T)

    mm = jnp.bfloat16 if match_kernel_precision else jnp.float32
    wi = w_ih.T.astype(mm)                      # [D, 3H]
    wh = w_hh.T.astype(mm)                      # [H, 3H]
    b_ih_r, b_ih_z, b_ih_n = jnp.split(b_ih.astype(jnp.float32), 3)
    b_hh_r, b_hh_z, b_hh_n = jnp.split(b_hh.astype(jnp.float32), 3)
    gi_bias = jnp.concatenate([b_ih_r + b_hh_r, b_ih_z + b_hh_z, b_ih_n])

    def step(h, inp):
        x_t, t = inp
        gi = jnp.dot(x_t.astype(mm), wi,
                     preferred_element_type=jnp.float32) + gi_bias
        if match_kernel_precision:
            gi = gi.astype(jnp.bfloat16)        # kernel stores gi in bf16
        gh = jnp.dot(h.astype(mm), wh, preferred_element_type=jnp.float32)
        r = jax.nn.sigmoid(gi[:, :H] + gh[:, :H])
        z = jax.nn.sigmoid(gi[:, H:2 * H] + gh[:, H:2 * H])
        n = jnp.tanh(gi[:, 2 * H:] + r * (gh[:, 2 * H:] + b_hh_n))
        h_new = n + z * (h - n)
        valid = (t < lengths)[:, None]
        return jnp.where(valid, h_new, h), None

    x_tm = jnp.transpose(subtokens_embed, (1, 0, 2))
    h0 = jnp.zeros((N, H), jnp.float32)
    h_final, _ = jax.lax.scan(step, h0, (x_tm, jnp.arange(T)))
    return h_final


if __name__ == "__main__":
    key = jax.random.PRNGKey(0)
    N, T, D, H = 8, 6, 32, 32      # n nodes, max len, input_size, output_size
    PAD_IDX = 0

    k1, k2, k3, k4, k5, k6, k7 = jax.random.split(key, 7)

    # Deterministic GRU parameters in PyTorch layout (gate order r,z,n).
    scale = 1.0 / jnp.sqrt(H)
    w_ih = jax.random.uniform(k1, (3 * H, D), minval=-scale, maxval=scale).astype(jnp.float32)
    w_hh = jax.random.uniform(k2, (3 * H, H), minval=-scale, maxval=scale).astype(jnp.float32)
    b_ih = jax.random.uniform(k3, (3 * H,), minval=-scale, maxval=scale).astype(jnp.float32)
    b_hh = jax.random.uniform(k4, (3 * H,), minval=-scale, maxval=scale).astype(jnp.float32)
    params = (w_ih, w_hh, b_ih, b_hh)

    # Inputs: embeddings + node ids with trailing padding (lengths >= 1).
    subtokens_embed = jax.random.normal(k5, (N, T, D), dtype=jnp.float32)
    lengths = jax.random.randint(k6, (N,), 1, T + 1)
    pos = jnp.arange(T)[None, :]
    real_ids = jax.random.randint(k7, (N, T), 1, 100)
    node_ids = jnp.where(pos < lengths[:, None], real_ids, PAD_IDX).astype(jnp.int32)

    out = rnn_layer_forward(subtokens_embed, node_ids, params, pad_idx=PAD_IDX)
    out = jax.block_until_ready(out)
    assert out.shape == (N, H)

    # Precision-matched reference (bf16 MXU operands + bf16 gi, f32 state).
    ref_match = _reference(subtokens_embed, node_ids, params, PAD_IDX,
                           match_kernel_precision=True)
    assert jnp.allclose(out, ref_match, atol=2e-3, rtol=2e-3)

    # Full-precision reference (looser tolerance covers bf16 rounding).
    ref_f32 = _reference(subtokens_embed, node_ids, params, PAD_IDX,
                         match_kernel_precision=False)
    assert jnp.allclose(out, ref_f32, atol=5e-2, rtol=5e-2)

    print("KERNEL_OK")
</pallas_src>

<mosaic_0001>
module attributes {stable_mosaic.version = 11 : i64} {
  func.func @_gru_kernel(%arg0: i32, %arg1: memref<6x16x32xbf16, #tpu.memory_space<vmem>>, %arg2: memref<16x1xi32, #tpu.memory_space<vmem>>, %arg3: memref<32x384xbf16, #tpu.memory_space<vmem>>, %arg4: memref<128x384xbf16, #tpu.memory_space<vmem>>, %arg5: memref<1x384xf32, #tpu.memory_space<vmem>>, %arg6: memref<1x128xf32, #tpu.memory_space<vmem>>, %arg7: memref<16x128xf32, #tpu.memory_space<vmem>>, %arg8: memref<6x16x384xbf16, #tpu.memory_space<vmem>>) attributes {dimension_semantics = [#tpu.dimension_semantics<parallel>], iteration_bounds = array<i64: 1>, scalar_prefetch = 0 : i64, scratch_operands = 1 : i64, tpu.core_type = #tpu.core_type<tc>, window_params = [{transform_indices = @transform_0, window_bounds = array<i64: 6, 16, 32>}, {transform_indices = @transform_1, window_bounds = array<i64: 16, 1>}, {pipeline_mode = #tpu.pipeline_mode<synchronous>, transform_indices = @transform_2, window_bounds = array<i64: 32, 384>}, {pipeline_mode = #tpu.pipeline_mode<synchronous>, transform_indices = @transform_3, window_bounds = array<i64: 128, 384>}, {pipeline_mode = #tpu.pipeline_mode<synchronous>, transform_indices = @transform_4, window_bounds = array<i64: 1, 384>}, {pipeline_mode = #tpu.pipeline_mode<synchronous>, transform_indices = @transform_5, window_bounds = array<i64: 1, 128>}, {transform_indices = @transform_6, window_bounds = array<i64: 16, 128>}]} {
    %c0_i32 = arith.constant 0 : i32
    %0 = arith.index_cast %c0_i32 : i32 to index
    %c0 = arith.constant 0 : index
    %c0_0 = arith.constant 0 : index
    %1 = vector.load %arg1[%0, %c0, %c0_0] : memref<6x16x32xbf16, #tpu.memory_space<vmem>>, vector<1x16x32xbf16>
    %2 = vector.shape_cast %1 : vector<1x16x32xbf16> to vector<16x32xbf16>
    %c0_1 = arith.constant 0 : index
    %c0_2 = arith.constant 0 : index
    %3 = vector.load %arg3[%c0_1, %c0_2] : memref<32x384xbf16, #tpu.memory_space<vmem>>, vector<32x384xbf16>
    %cst = arith.constant dense<0.000000e+00> : vector<16x384xf32>
    %4 = tpu.matmul %2, %3, %cst {dimension_numbers = #tpu.dot_dimension_numbers<[1], [0], [0], [1], [0, 0, 1, 1], [], []>} : vector<16x32xbf16>, vector<32x384xbf16>, vector<16x384xf32> -> vector<16x384xf32>
    %c0_3 = arith.constant 0 : index
    %c0_4 = arith.constant 0 : index
    %5 = vector.load %arg5[%c0_3, %c0_4] : memref<1x384xf32, #tpu.memory_space<vmem>>, vector<1x384xf32>
    %6 = vector.broadcast %5 : vector<1x384xf32> to vector<16x384xf32>
    %7 = arith.addf %4, %6 : vector<16x384xf32>
    %8 = arith.truncf %7 : vector<16x384xf32> to vector<16x384xbf16>
    %9 = arith.index_cast %c0_i32 : i32 to index
    %c0_5 = arith.constant 0 : index
    %c0_6 = arith.constant 0 : index
    %10 = vector.load %arg8[%9, %c0_5, %c0_6] : memref<6x16x384xbf16, #tpu.memory_space<vmem>>, vector<1x16x384xbf16>
    %11 = vector.shape_cast %10 : vector<1x16x384xbf16> to vector<16x384xbf16>
    %12 = vector.shape_cast %8 : vector<16x384xbf16> to vector<1x16x384xbf16>
    tpu.vector_store %arg8[%9, %c0_5, %c0_6], %12 {strides = array<i32>} : memref<6x16x384xbf16, #tpu.memory_space<vmem>>, vector<1x16x384xbf16>,
    %c1_i32 = arith.constant 1 : i32
    %13 = arith.index_cast %c1_i32 : i32 to index
    %c0_7 = arith.constant 0 : index
    %c0_8 = arith.constant 0 : index
    %14 = vector.load %arg1[%13, %c0_7, %c0_8] : memref<6x16x32xbf16, #tpu.memory_space<vmem>>, vector<1x16x32xbf16>
    %15 = vector.shape_cast %14 : vector<1x16x32xbf16> to vector<16x32xbf16>
    %c0_9 = arith.constant 0 : index
    %c0_10 = arith.constant 0 : index
    %16 = vector.load %arg3[%c0_9, %c0_10] : memref<32x384xbf16, #tpu.memory_space<vmem>>, vector<32x384xbf16>
    %cst_11 = arith.constant dense<0.000000e+00> : vector<16x384xf32>
    %17 = tpu.matmul %15, %16, %cst_11 {dimension_numbers = #tpu.dot_dimension_numbers<[1], [0], [0], [1], [0, 0, 1, 1], [], []>} : vector<16x32xbf16>, vector<32x384xbf16>, vector<16x384xf32> -> vector<16x384xf32>
    %c0_12 = arith.constant 0 : index
    %c0_13 = arith.constant 0 : index
    %18 = vector.load %arg5[%c0_12, %c0_13] : memref<1x384xf32, #tpu.memory_space<vmem>>, vector<1x384xf32>
    %19 = vector.broadcast %18 : vector<1x384xf32> to vector<16x384xf32>
    %20 = arith.addf %17, %19 : vector<16x384xf32>
    %21 = arith.truncf %20 : vector<16x384xf32> to vector<16x384xbf16>
    %22 = arith.index_cast %c1_i32 : i32 to index
    %c0_14 = arith.constant 0 : index
    %c0_15 = arith.constant 0 : index
    %23 = vector.load %arg8[%22, %c0_14, %c0_15] : memref<6x16x384xbf16, #tpu.memory_space<vmem>>, vector<1x16x384xbf16>
    %24 = vector.shape_cast %23 : vector<1x16x384xbf16> to vector<16x384xbf16>
    %25 = vector.shape_cast %21 : vector<16x384xbf16> to vector<1x16x384xbf16>
    tpu.vector_store %arg8[%22, %c0_14, %c0_15], %25 {strides = array<i32>} : memref<6x16x384xbf16, #tpu.memory_space<vmem>>, vector<1x16x384xbf16>,
    %c2_i32 = arith.constant 2 : i32
    %26 = arith.index_cast %c2_i32 : i32 to index
    %c0_16 = arith.constant 0 : index
    %c0_17 = arith.constant 0 : index
    %27 = vector.load %arg1[%26, %c0_16, %c0_17] : memref<6x16x32xbf16, #tpu.memory_space<vmem>>, vector<1x16x32xbf16>
    %28 = vector.shape_cast %27 : vector<1x16x32xbf16> to vector<16x32xbf16>
    %c0_18 = arith.constant 0 : index
    %c0_19 = arith.constant 0 : index
    %29 = vector.load %arg3[%c0_18, %c0_19] : memref<32x384xbf16, #tpu.memory_space<vmem>>, vector<32x384xbf16>
    %cst_20 = arith.constant dense<0.000000e+00> : vector<16x384xf32>
    %30 = tpu.matmul %28, %29, %cst_20 {dimension_numbers = #tpu.dot_dimension_numbers<[1], [0], [0], [1], [0, 0, 1, 1], [], []>} : vector<16x32xbf16>, vector<32x384xbf16>, vector<16x384xf32> -> vector<16x384xf32>
    %c0_21 = arith.constant 0 : index
    %c0_22 = arith.constant 0 : index
    %31 = vector.load %arg5[%c0_21, %c0_22] : memref<1x384xf32, #tpu.memory_space<vmem>>, vector<1x384xf32>
    %32 = vector.broadcast %31 : vector<1x384xf32> to vector<16x384xf32>
    %33 = arith.addf %30, %32 : vector<16x384xf32>
    %34 = arith.truncf %33 : vector<16x384xf32> to vector<16x384xbf16>
    %35 = arith.index_cast %c2_i32 : i32 to index
    %c0_23 = arith.constant 0 : index
    %c0_24 = arith.constant 0 : index
    %36 = vector.load %arg8[%35, %c0_23, %c0_24] : memref<6x16x384xbf16, #tpu.memory_space<vmem>>, vector<1x16x384xbf16>
    %37 = vector.shape_cast %36 : vector<1x16x384xbf16> to vector<16x384xbf16>
    %38 = vector.shape_cast %34 : vector<16x384xbf16> to vector<1x16x384xbf16>
    tpu.vector_store %arg8[%35, %c0_23, %c0_24], %38 {strides = array<i32>} : memref<6x16x384xbf16, #tpu.memory_space<vmem>>, vector<1x16x384xbf16>,
    %c3_i32 = arith.constant 3 : i32
    %39 = arith.index_cast %c3_i32 : i32 to index
    %c0_25 = arith.constant 0 : index
    %c0_26 = arith.constant 0 : index
    %40 = vector.load %arg1[%39, %c0_25, %c0_26] : memref<6x16x32xbf16, #tpu.memory_space<vmem>>, vector<1x16x32xbf16>
    %41 = vector.shape_cast %40 : vector<1x16x32xbf16> to vector<16x32xbf16>
    %c0_27 = arith.constant 0 : index
    %c0_28 = arith.constant 0 : index
    %42 = vector.load %arg3[%c0_27, %c0_28] : memref<32x384xbf16, #tpu.memory_space<vmem>>, vector<32x384xbf16>
    %cst_29 = arith.constant dense<0.000000e+00> : vector<16x384xf32>
    %43 = tpu.matmul %41, %42, %cst_29 {dimension_numbers = #tpu.dot_dimension_numbers<[1], [0], [0], [1], [0, 0, 1, 1], [], []>} : vector<16x32xbf16>, vector<32x384xbf16>, vector<16x384xf32> -> vector<16x384xf32>
    %c0_30 = arith.constant 0 : index
    %c0_31 = arith.constant 0 : index
    %44 = vector.load %arg5[%c0_30, %c0_31] : memref<1x384xf32, #tpu.memory_space<vmem>>, vector<1x384xf32>
    %45 = vector.broadcast %44 : vector<1x384xf32> to vector<16x384xf32>
    %46 = arith.addf %43, %45 : vector<16x384xf32>
    %47 = arith.truncf %46 : vector<16x384xf32> to vector<16x384xbf16>
    %48 = arith.index_cast %c3_i32 : i32 to index
    %c0_32 = arith.constant 0 : index
    %c0_33 = arith.constant 0 : index
    %49 = vector.load %arg8[%48, %c0_32, %c0_33] : memref<6x16x384xbf16, #tpu.memory_space<vmem>>, vector<1x16x384xbf16>
    %50 = vector.shape_cast %49 : vector<1x16x384xbf16> to vector<16x384xbf16>
    %51 = vector.shape_cast %47 : vector<16x384xbf16> to vector<1x16x384xbf16>
    tpu.vector_store %arg8[%48, %c0_32, %c0_33], %51 {strides = array<i32>} : memref<6x16x384xbf16, #tpu.memory_space<vmem>>, vector<1x16x384xbf16>,
    %c4_i32 = arith.constant 4 : i32
    %52 = arith.index_cast %c4_i32 : i32 to index
    %c0_34 = arith.constant 0 : index
    %c0_35 = arith.constant 0 : index
    %53 = vector.load %arg1[%52, %c0_34, %c0_35] : memref<6x16x32xbf16, #tpu.memory_space<vmem>>, vector<1x16x32xbf16>
    %54 = vector.shape_cast %53 : vector<1x16x32xbf16> to vector<16x32xbf16>
    %c0_36 = arith.constant 0 : index
    %c0_37 = arith.constant 0 : index
    %55 = vector.load %arg3[%c0_36, %c0_37] : memref<32x384xbf16, #tpu.memory_space<vmem>>, vector<32x384xbf16>
    %cst_38 = arith.constant dense<0.000000e+00> : vector<16x384xf32>
    %56 = tpu.matmul %54, %55, %cst_38 {dimension_numbers = #tpu.dot_dimension_numbers<[1], [0], [0], [1], [0, 0, 1, 1], [], []>} : vector<16x32xbf16>, vector<32x384xbf16>, vector<16x384xf32> -> vector<16x384xf32>
    %c0_39 = arith.constant 0 : index
    %c0_40 = arith.constant 0 : index
    %57 = vector.load %arg5[%c0_39, %c0_40] : memref<1x384xf32, #tpu.memory_space<vmem>>, vector<1x384xf32>
    %58 = vector.broadcast %57 : vector<1x384xf32> to vector<16x384xf32>
    %59 = arith.addf %56, %58 : vector<16x384xf32>
    %60 = arith.truncf %59 : vector<16x384xf32> to vector<16x384xbf16>
    %61 = arith.index_cast %c4_i32 : i32 to index
    %c0_41 = arith.constant 0 : index
    %c0_42 = arith.constant 0 : index
    %62 = vector.load %arg8[%61, %c0_41, %c0_42] : memref<6x16x384xbf16, #tpu.memory_space<vmem>>, vector<1x16x384xbf16>
    %63 = vector.shape_cast %62 : vector<1x16x384xbf16> to vector<16x384xbf16>
    %64 = vector.shape_cast %60 : vector<16x384xbf16> to vector<1x16x384xbf16>
    tpu.vector_store %arg8[%61, %c0_41, %c0_42], %64 {strides = array<i32>} : memref<6x16x384xbf16, #tpu.memory_space<vmem>>, vector<1x16x384xbf16>,
    %c5_i32 = arith.constant 5 : i32
    %65 = arith.index_cast %c5_i32 : i32 to index
    %c0_43 = arith.constant 0 : index
    %c0_44 = arith.constant 0 : index
    %66 = vector.load %arg1[%65, %c0_43, %c0_44] : memref<6x16x32xbf16, #tpu.memory_space<vmem>>, vector<1x16x32xbf16>
    %67 = vector.shape_cast %66 : vector<1x16x32xbf16> to vector<16x32xbf16>
    %c0_45 = arith.constant 0 : index
    %c0_46 = arith.constant 0 : index
    %68 = vector.load %arg3[%c0_45, %c0_46] : memref<32x384xbf16, #tpu.memory_space<vmem>>, vector<32x384xbf16>
    %cst_47 = arith.constant dense<0.000000e+00> : vector<16x384xf32>
    %69 = tpu.matmul %67, %68, %cst_47 {dimension_numbers = #tpu.dot_dimension_numbers<[1], [0], [0], [1], [0, 0, 1, 1], [], []>} : vector<16x32xbf16>, vector<32x384xbf16>, vector<16x384xf32> -> vector<16x384xf32>
    %c0_48 = arith.constant 0 : index
    %c0_49 = arith.constant 0 : index
    %70 = vector.load %arg5[%c0_48, %c0_49] : memref<1x384xf32, #tpu.memory_space<vmem>>, vector<1x384xf32>
    %71 = vector.broadcast %70 : vector<1x384xf32> to vector<16x384xf32>
    %72 = arith.addf %69, %71 : vector<16x384xf32>
    %73 = arith.truncf %72 : vector<16x384xf32> to vector<16x384xbf16>
    %74 = arith.index_cast %c5_i32 : i32 to index
    %c0_50 = arith.constant 0 : index
    %c0_51 = arith.constant 0 : index
    %75 = vector.load %arg8[%74, %c0_50, %c0_51] : memref<6x16x384xbf16, #tpu.memory_space<vmem>>, vector<1x16x384xbf16>
    %76 = vector.shape_cast %75 : vector<1x16x384xbf16> to vector<16x384xbf16>
    %77 = vector.shape_cast %73 : vector<16x384xbf16> to vector<1x16x384xbf16>
    tpu.vector_store %arg8[%74, %c0_50, %c0_51], %77 {strides = array<i32>} : memref<6x16x384xbf16, #tpu.memory_space<vmem>>, vector<1x16x384xbf16>,
    %c6_i32 = arith.constant 6 : i32
    %c0_52 = arith.constant 0 : index
    %c0_53 = arith.constant 0 : index
    %78 = vector.load %arg2[%c0_52, %c0_53] : memref<16x1xi32, #tpu.memory_space<vmem>>, vector<16x1xi32>
    %c0_54 = arith.constant 0 : index
    %c0_55 = arith.constant 0 : index
    %79 = vector.load %arg6[%c0_54, %c0_55] : memref<1x128xf32, #tpu.memory_space<vmem>>, vector<1x128xf32>
    %cst_56 = arith.constant 0.000000e+00 : f32
    %80 = vector.broadcast %cst_56 : f32 to vector<16x128xf32>
    %c0_i32_57 = arith.constant 0 : i32
    %81 = arith.index_cast %c0_i32_57 : i32 to index
    %c0_58 = arith.constant 0 : index
    %c0_59 = arith.constant 0 : index
    %82 = vector.load %arg8[%81, %c0_58, %c0_59] : memref<6x16x384xbf16, #tpu.memory_space<vmem>>, vector<1x16x384xbf16>
    %83 = vector.shape_cast %82 : vector<1x16x384xbf16> to vector<16x384xbf16>
    %84 = arith.truncf %80 : vector<16x128xf32> to vector<16x128xbf16>
    %c0_60 = arith.constant 0 : index
    %c0_61 = arith.constant 0 : index
    %85 = vector.load %arg4[%c0_60, %c0_61] : memref<128x384xbf16, #tpu.memory_space<vmem>>, vector<128x384xbf16>
    %cst_62 = arith.constant dense<0.000000e+00> : vector<16x384xf32>
    %86 = tpu.matmul %84, %85, %cst_62 {dimension_numbers = #tpu.dot_dimension_numbers<[1], [0], [0], [1], [0, 0, 1, 1], [], []>} : vector<16x128xbf16>, vector<128x384xbf16>, vector<16x384xf32> -> vector<16x384xf32>
    %87 = vector.extract_strided_slice %83 {offsets = [0, 0], sizes = [16, 128], strides = [1, 1]} : vector<16x384xbf16> to vector<16x128xbf16>
    %88 = vector.extract_strided_slice %86 {offsets = [0, 0], sizes = [16, 128], strides = [1, 1]} : vector<16x384xf32> to vector<16x128xf32>
    %89 = arith.extf %87 : vector<16x128xbf16> to vector<16x128xf32>
    %90 = arith.addf %89, %88 : vector<16x128xf32>
    %91 = arith.negf %90 : vector<16x128xf32>
    %92 = math.exp %91 : vector<16x128xf32>
    %cst_63 = arith.constant 1.000000e+00 : f32
    %93 = vector.broadcast %cst_63 : f32 to vector<16x128xf32>
    %94 = arith.addf %93, %92 : vector<16x128xf32>
    %95 = arith.divf %93, %94 : vector<16x128xf32>
    %96 = vector.extract_strided_slice %83 {offsets = [0, 128], sizes = [16, 128], strides = [1, 1]} : vector<16x384xbf16> to vector<16x128xbf16>
    %97 = vector.extract_strided_slice %86 {offsets = [0, 128], sizes = [16, 128], strides = [1, 1]} : vector<16x384xf32> to vector<16x128xf32>
    %98 = arith.extf %96 : vector<16x128xbf16> to vector<16x128xf32>
    %99 = arith.addf %98, %97 : vector<16x128xf32>
    %100 = arith.negf %99 : vector<16x128xf32>
    %101 = math.exp %100 : vector<16x128xf32>
    %cst_64 = arith.constant 1.000000e+00 : f32
    %102 = vector.broadcast %cst_64 : f32 to vector<16x128xf32>
    %103 = arith.addf %102, %101 : vector<16x128xf32>
    %104 = arith.divf %102, %103 : vector<16x128xf32>
    %105 = vector.extract_strided_slice %83 {offsets = [0, 256], sizes = [16, 128], strides = [1, 1]} : vector<16x384xbf16> to vector<16x128xbf16>
    %106 = vector.extract_strided_slice %86 {offsets = [0, 256], sizes = [16, 128], strides = [1, 1]} : vector<16x384xf32> to vector<16x128xf32>
    %107 = vector.broadcast %79 : vector<1x128xf32> to vector<16x128xf32>
    %108 = arith.addf %106, %107 : vector<16x128xf32>
    %109 = arith.mulf %95, %108 : vector<16x128xf32>
    %110 = arith.extf %105 : vector<16x128xbf16> to vector<16x128xf32>
    %111 = arith.addf %110, %109 : vector<16x128xf32>
    %112 = math.tanh %111 : vector<16x128xf32>
    %113 = arith.subf %80, %112 : vector<16x128xf32>
    %114 = arith.mulf %104, %113 : vector<16x128xf32>
    %115 = arith.addf %112, %114 : vector<16x128xf32>
    %116 = vector.broadcast %c0_i32_57 : i32 to vector<16x1xi32>
    %117 = arith.cmpi slt, %116, %78 : vector<16x1xi32>
    %118 = vector.shape_cast %117 : vector<16x1xi1> to vector<16x1xi1>
    %119 = vector.broadcast %118 : vector<16x1xi1> to vector<16x128xi1>
    %120 = arith.select %119, %115, %80 : vector<16x128xi1>, vector<16x128xf32>
    %c1_i32_65 = arith.constant 1 : i32
    %121 = arith.index_cast %c1_i32_65 : i32 to index
    %c0_66 = arith.constant 0 : index
    %c0_67 = arith.constant 0 : index
    %122 = vector.load %arg8[%121, %c0_66, %c0_67] : memref<6x16x384xbf16, #tpu.memory_space<vmem>>, vector<1x16x384xbf16>
    %123 = vector.shape_cast %122 : vector<1x16x384xbf16> to vector<16x384xbf16>
    %124 = arith.truncf %120 : vector<16x128xf32> to vector<16x128xbf16>
    %c0_68 = arith.constant 0 : index
    %c0_69 = arith.constant 0 : index
    %125 = vector.load %arg4[%c0_68, %c0_69] : memref<128x384xbf16, #tpu.memory_space<vmem>>, vector<128x384xbf16>
    %cst_70 = arith.constant dense<0.000000e+00> : vector<16x384xf32>
    %126 = tpu.matmul %124, %125, %cst_70 {dimension_numbers = #tpu.dot_dimension_numbers<[1], [0], [0], [1], [0, 0, 1, 1], [], []>} : vector<16x128xbf16>, vector<128x384xbf16>, vector<16x384xf32> -> vector<16x384xf32>
    %127 = vector.extract_strided_slice %123 {offsets = [0, 0], sizes = [16, 128], strides = [1, 1]} : vector<16x384xbf16> to vector<16x128xbf16>
    %128 = vector.extract_strided_slice %126 {offsets = [0, 0], sizes = [16, 128], strides = [1, 1]} : vector<16x384xf32> to vector<16x128xf32>
    %129 = arith.extf %127 : vector<16x128xbf16> to vector<16x128xf32>
    %130 = arith.addf %129, %128 : vector<16x128xf32>
    %131 = arith.negf %130 : vector<16x128xf32>
    %132 = math.exp %131 : vector<16x128xf32>
    %cst_71 = arith.constant 1.000000e+00 : f32
    %133 = vector.broadcast %cst_71 : f32 to vector<16x128xf32>
    %134 = arith.addf %133, %132 : vector<16x128xf32>
    %135 = arith.divf %133, %134 : vector<16x128xf32>
    %136 = vector.extract_strided_slice %123 {offsets = [0, 128], sizes = [16, 128], strides = [1, 1]} : vector<16x384xbf16> to vector<16x128xbf16>
    %137 = vector.extract_strided_slice %126 {offsets = [0, 128], sizes = [16, 128], strides = [1, 1]} : vector<16x384xf32> to vector<16x128xf32>
    %138 = arith.extf %136 : vector<16x128xbf16> to vector<16x128xf32>
    %139 = arith.addf %138, %137 : vector<16x128xf32>
    %140 = arith.negf %139 : vector<16x128xf32>
    %141 = math.exp %140 : vector<16x128xf32>
    %cst_72 = arith.constant 1.000000e+00 : f32
    %142 = vector.broadcast %cst_72 : f32 to vector<16x128xf32>
    %143 = arith.addf %142, %141 : vector<16x128xf32>
    %144 = arith.divf %142, %143 : vector<16x128xf32>
    %145 = vector.extract_strided_slice %123 {offsets = [0, 256], sizes = [16, 128], strides = [1, 1]} : vector<16x384xbf16> to vector<16x128xbf16>
    %146 = vector.extract_strided_slice %126 {offsets = [0, 256], sizes = [16, 128], strides = [1, 1]} : vector<16x384xf32> to vector<16x128xf32>
    %147 = vector.broadcast %79 : vector<1x128xf32> to vector<16x128xf32>
    %148 = arith.addf %146, %147 : vector<16x128xf32>
    %149 = arith.mulf %135, %148 : vector<16x128xf32>
    %150 = arith.extf %145 : vector<16x128xbf16> to vector<16x128xf32>
    %151 = arith.addf %150, %149 : vector<16x128xf32>
    %152 = math.tanh %151 : vector<16x128xf32>
    %153 = arith.subf %120, %152 : vector<16x128xf32>
    %154 = arith.mulf %144, %153 : vector<16x128xf32>
    %155 = arith.addf %152, %154 : vector<16x128xf32>
    %156 = vector.broadcast %c1_i32_65 : i32 to vector<16x1xi32>
    %157 = arith.cmpi slt, %156, %78 : vector<16x1xi32>
    %158 = vector.shape_cast %157 : vector<16x1xi1> to vector<16x1xi1>
    %159 = vector.broadcast %158 : vector<16x1xi1> to vector<16x128xi1>
    %160 = arith.select %159, %155, %120 : vector<16x128xi1>, vector<16x128xf32>
    %c2_i32_73 = arith.constant 2 : i32
    %161 = arith.index_cast %c2_i32_73 : i32 to index
    %c0_74 = arith.constant 0 : index
    %c0_75 = arith.constant 0 : index
    %162 = vector.load %arg8[%161, %c0_74, %c0_75] : memref<6x16x384xbf16, #tpu.memory_space<vmem>>, vector<1x16x384xbf16>
    %163 = vector.shape_cast %162 : vector<1x16x384xbf16> to vector<16x384xbf16>
    %164 = arith.truncf %160 : vector<16x128xf32> to vector<16x128xbf16>
    %c0_76 = arith.constant 0 : index
    %c0_77 = arith.constant 0 : index
    %165 = vector.load %arg4[%c0_76, %c0_77] : memref<128x384xbf16, #tpu.memory_space<vmem>>, vector<128x384xbf16>
    %cst_78 = arith.constant dense<0.000000e+00> : vector<16x384xf32>
    %166 = tpu.matmul %164, %165, %cst_78 {dimension_numbers = #tpu.dot_dimension_numbers<[1], [0], [0], [1], [0, 0, 1, 1], [], []>} : vector<16x128xbf16>, vector<128x384xbf16>, vector<16x384xf32> -> vector<16x384xf32>
    %167 = vector.extract_strided_slice %163 {offsets = [0, 0], sizes = [16, 128], strides = [1, 1]} : vector<16x384xbf16> to vector<16x128xbf16>
    %168 = vector.extract_strided_slice %166 {offsets = [0, 0], sizes = [16, 128], strides = [1, 1]} : vector<16x384xf32> to vector<16x128xf32>
    %169 = arith.extf %167 : vector<16x128xbf16> to vector<16x128xf32>
    %170 = arith.addf %169, %168 : vector<16x128xf32>
    %171 = arith.negf %170 : vector<16x128xf32>
    %172 = math.exp %171 : vector<16x128xf32>
    %cst_79 = arith.constant 1.000000e+00 : f32
    %173 = vector.broadcast %cst_79 : f32 to vector<16x128xf32>
    %174 = arith.addf %173, %172 : vector<16x128xf32>
    %175 = arith.divf %173, %174 : vector<16x128xf32>
    %176 = vector.extract_strided_slice %163 {offsets = [0, 128], sizes = [16, 128], strides = [1, 1]} : vector<16x384xbf16> to vector<16x128xbf16>
    %177 = vector.extract_strided_slice %166 {offsets = [0, 128], sizes = [16, 128], strides = [1, 1]} : vector<16x384xf32> to vector<16x128xf32>
    %178 = arith.extf %176 : vector<16x128xbf16> to vector<16x128xf32>
    %179 = arith.addf %178, %177 : vector<16x128xf32>
    %180 = arith.negf %179 : vector<16x128xf32>
    %181 = math.exp %180 : vector<16x128xf32>
    %cst_80 = arith.constant 1.000000e+00 : f32
    %182 = vector.broadcast %cst_80 : f32 to vector<16x128xf32>
    %183 = arith.addf %182, %181 : vector<16x128xf32>
    %184 = arith.divf %182, %183 : vector<16x128xf32>
    %185 = vector.extract_strided_slice %163 {offsets = [0, 256], sizes = [16, 128], strides = [1, 1]} : vector<16x384xbf16> to vector<16x128xbf16>
    %186 = vector.extract_strided_slice %166 {offsets = [0, 256], sizes = [16, 128], strides = [1, 1]} : vector<16x384xf32> to vector<16x128xf32>
    %187 = vector.broadcast %79 : vector<1x128xf32> to vector<16x128xf32>
    %188 = arith.addf %186, %187 : vector<16x128xf32>
    %189 = arith.mulf %175, %188 : vector<16x128xf32>
    %190 = arith.extf %185 : vector<16x128xbf16> to vector<16x128xf32>
    %191 = arith.addf %190, %189 : vector<16x128xf32>
    %192 = math.tanh %191 : vector<16x128xf32>
    %193 = arith.subf %160, %192 : vector<16x128xf32>
    %194 = arith.mulf %184, %193 : vector<16x128xf32>
    %195 = arith.addf %192, %194 : vector<16x128xf32>
    %196 = vector.broadcast %c2_i32_73 : i32 to vector<16x1xi32>
    %197 = arith.cmpi slt, %196, %78 : vector<16x1xi32>
    %198 = vector.shape_cast %197 : vector<16x1xi1> to vector<16x1xi1>
    %199 = vector.broadcast %198 : vector<16x1xi1> to vector<16x128xi1>
    %200 = arith.select %199, %195, %160 : vector<16x128xi1>, vector<16x128xf32>
    %c3_i32_81 = arith.constant 3 : i32
    %201 = arith.index_cast %c3_i32_81 : i32 to index
    %c0_82 = arith.constant 0 : index
    %c0_83 = arith.constant 0 : index
    %202 = vector.load %arg8[%201, %c0_82, %c0_83] : memref<6x16x384xbf16, #tpu.memory_space<vmem>>, vector<1x16x384xbf16>
    %203 = vector.shape_cast %202 : vector<1x16x384xbf16> to vector<16x384xbf16>
    %204 = arith.truncf %200 : vector<16x128xf32> to vector<16x128xbf16>
    %c0_84 = arith.constant 0 : index
    %c0_85 = arith.constant 0 : index
    %205 = vector.load %arg4[%c0_84, %c0_85] : memref<128x384xbf16, #tpu.memory_space<vmem>>, vector<128x384xbf16>
    %cst_86 = arith.constant dense<0.000000e+00> : vector<16x384xf32>
    %206 = tpu.matmul %204, %205, %cst_86 {dimension_numbers = #tpu.dot_dimension_numbers<[1], [0], [0], [1], [0, 0, 1, 1], [], []>} : vector<16x128xbf16>, vector<128x384xbf16>, vector<16x384xf32> -> vector<16x384xf32>
    %207 = vector.extract_strided_slice %203 {offsets = [0, 0], sizes = [16, 128], strides = [1, 1]} : vector<16x384xbf16> to vector<16x128xbf16>
    %208 = vector.extract_strided_slice %206 {offsets = [0, 0], sizes = [16, 128], strides = [1, 1]} : vector<16x384xf32> to vector<16x128xf32>
    %209 = arith.extf %207 : vector<16x128xbf16> to vector<16x128xf32>
    %210 = arith.addf %209, %208 : vector<16x128xf32>
    %211 = arith.negf %210 : vector<16x128xf32>
    %212 = math.exp %211 : vector<16x128xf32>
    %cst_87 = arith.constant 1.000000e+00 : f32
    %213 = vector.broadcast %cst_87 : f32 to vector<16x128xf32>
    %214 = arith.addf %213, %212 : vector<16x128xf32>
    %215 = arith.divf %213, %214 : vector<16x128xf32>
    %216 = vector.extract_strided_slice %203 {offsets = [0, 128], sizes = [16, 128], strides = [1, 1]} : vector<16x384xbf16> to vector<16x128xbf16>
    %217 = vector.extract_strided_slice %206 {offsets = [0, 128], sizes = [16, 128], strides = [1, 1]} : vector<16x384xf32> to vector<16x128xf32>
    %218 = arith.extf %216 : vector<16x128xbf16> to vector<16x128xf32>
    %219 = arith.addf %218, %217 : vector<16x128xf32>
    %220 = arith.negf %219 : vector<16x128xf32>
    %221 = math.exp %220 : vector<16x128xf32>
    %cst_88 = arith.constant 1.000000e+00 : f32
    %222 = vector.broadcast %cst_88 : f32 to vector<16x128xf32>
    %223 = arith.addf %222, %221 : vector<16x128xf32>
    %224 = arith.divf %222, %223 : vector<16x128xf32>
    %225 = vector.extract_strided_slice %203 {offsets = [0, 256], sizes = [16, 128], strides = [1, 1]} : vector<16x384xbf16> to vector<16x128xbf16>
    %226 = vector.extract_strided_slice %206 {offsets = [0, 256], sizes = [16, 128], strides = [1, 1]} : vector<16x384xf32> to vector<16x128xf32>
    %227 = vector.broadcast %79 : vector<1x128xf32> to vector<16x128xf32>
    %228 = arith.addf %226, %227 : vector<16x128xf32>
    %229 = arith.mulf %215, %228 : vector<16x128xf32>
    %230 = arith.extf %225 : vector<16x128xbf16> to vector<16x128xf32>
    %231 = arith.addf %230, %229 : vector<16x128xf32>
    %232 = math.tanh %231 : vector<16x128xf32>
    %233 = arith.subf %200, %232 : vector<16x128xf32>
    %234 = arith.mulf %224, %233 : vector<16x128xf32>
    %235 = arith.addf %232, %234 : vector<16x128xf32>
    %236 = vector.broadcast %c3_i32_81 : i32 to vector<16x1xi32>
    %237 = arith.cmpi slt, %236, %78 : vector<16x1xi32>
    %238 = vector.shape_cast %237 : vector<16x1xi1> to vector<16x1xi1>
    %239 = vector.broadcast %238 : vector<16x1xi1> to vector<16x128xi1>
    %240 = arith.select %239, %235, %200 : vector<16x128xi1>, vector<16x128xf32>
    %c4_i32_89 = arith.constant 4 : i32
    %241 = arith.index_cast %c4_i32_89 : i32 to index
    %c0_90 = arith.constant 0 : index
    %c0_91 = arith.constant 0 : index
    %242 = vector.load %arg8[%241, %c0_90, %c0_91] : memref<6x16x384xbf16, #tpu.memory_space<vmem>>, vector<1x16x384xbf16>
    %243 = vector.shape_cast %242 : vector<1x16x384xbf16> to vector<16x384xbf16>
    %244 = arith.truncf %240 : vector<16x128xf32> to vector<16x128xbf16>
    %c0_92 = arith.constant 0 : index
    %c0_93 = arith.constant 0 : index
    %245 = vector.load %arg4[%c0_92, %c0_93] : memref<128x384xbf16, #tpu.memory_space<vmem>>, vector<128x384xbf16>
    %cst_94 = arith.constant dense<0.000000e+00> : vector<16x384xf32>
    %246 = tpu.matmul %244, %245, %cst_94 {dimension_numbers = #tpu.dot_dimension_numbers<[1], [0], [0], [1], [0, 0, 1, 1], [], []>} : vector<16x128xbf16>, vector<128x384xbf16>, vector<16x384xf32> -> vector<16x384xf32>
    %247 = vector.extract_strided_slice %243 {offsets = [0, 0], sizes = [16, 128], strides = [1, 1]} : vector<16x384xbf16> to vector<16x128xbf16>
    %248 = vector.extract_strided_slice %246 {offsets = [0, 0], sizes = [16, 128], strides = [1, 1]} : vector<16x384xf32> to vector<16x128xf32>
    %249 = arith.extf %247 : vector<16x128xbf16> to vector<16x128xf32>
    %250 = arith.addf %249, %248 : vector<16x128xf32>
    %251 = arith.negf %250 : vector<16x128xf32>
    %252 = math.exp %251 : vector<16x128xf32>
    %cst_95 = arith.constant 1.000000e+00 : f32
    %253 = vector.broadcast %cst_95 : f32 to vector<16x128xf32>
    %254 = arith.addf %253, %252 : vector<16x128xf32>
    %255 = arith.divf %253, %254 : vector<16x128xf32>
    %256 = vector.extract_strided_slice %243 {offsets = [0, 128], sizes = [16, 128], strides = [1, 1]} : vector<16x384xbf16> to vector<16x128xbf16>
    %257 = vector.extract_strided_slice %246 {offsets = [0, 128], sizes = [16, 128], strides = [1, 1]} : vector<16x384xf32> to vector<16x128xf32>
    %258 = arith.extf %256 : vector<16x128xbf16> to vector<16x128xf32>
    %259 = arith.addf %258, %257 : vector<16x128xf32>
    %260 = arith.negf %259 : vector<16x128xf32>
    %261 = math.exp %260 : vector<16x128xf32>
    %cst_96 = arith.constant 1.000000e+00 : f32
    %262 = vector.broadcast %cst_96 : f32 to vector<16x128xf32>
    %263 = arith.addf %262, %261 : vector<16x128xf32>
    %264 = arith.divf %262, %263 : vector<16x128xf32>
    %265 = vector.extract_strided_slice %243 {offsets = [0, 256], sizes = [16, 128], strides = [1, 1]} : vector<16x384xbf16> to vector<16x128xbf16>
    %266 = vector.extract_strided_slice %246 {offsets = [0, 256], sizes = [16, 128], strides = [1, 1]} : vector<16x384xf32> to vector<16x128xf32>
    %267 = vector.broadcast %79 : vector<1x128xf32> to vector<16x128xf32>
    %268 = arith.addf %266, %267 : vector<16x128xf32>
    %269 = arith.mulf %255, %268 : vector<16x128xf32>
    %270 = arith.extf %265 : vector<16x128xbf16> to vector<16x128xf32>
    %271 = arith.addf %270, %269 : vector<16x128xf32>
    %272 = math.tanh %271 : vector<16x128xf32>
    %273 = arith.subf %240, %272 : vector<16x128xf32>
    %274 = arith.mulf %264, %273 : vector<16x128xf32>
    %275 = arith.addf %272, %274 : vector<16x128xf32>
    %276 = vector.broadcast %c4_i32_89 : i32 to vector<16x1xi32>
    %277 = arith.cmpi slt, %276, %78 : vector<16x1xi32>
    %278 = vector.shape_cast %277 : vector<16x1xi1> to vector<16x1xi1>
    %279 = vector.broadcast %278 : vector<16x1xi1> to vector<16x128xi1>
    %280 = arith.select %279, %275, %240 : vector<16x128xi1>, vector<16x128xf32>
    %c5_i32_97 = arith.constant 5 : i32
    %281 = arith.index_cast %c5_i32_97 : i32 to index
    %c0_98 = arith.constant 0 : index
    %c0_99 = arith.constant 0 : index
    %282 = vector.load %arg8[%281, %c0_98, %c0_99] : memref<6x16x384xbf16, #tpu.memory_space<vmem>>, vector<1x16x384xbf16>
    %283 = vector.shape_cast %282 : vector<1x16x384xbf16> to vector<16x384xbf16>
    %284 = arith.truncf %280 : vector<16x128xf32> to vector<16x128xbf16>
    %c0_100 = arith.constant 0 : index
    %c0_101 = arith.constant 0 : index
    %285 = vector.load %arg4[%c0_100, %c0_101] : memref<128x384xbf16, #tpu.memory_space<vmem>>, vector<128x384xbf16>
    %cst_102 = arith.constant dense<0.000000e+00> : vector<16x384xf32>
    %286 = tpu.matmul %284, %285, %cst_102 {dimension_numbers = #tpu.dot_dimension_numbers<[1], [0], [0], [1], [0, 0, 1, 1], [], []>} : vector<16x128xbf16>, vector<128x384xbf16>, vector<16x384xf32> -> vector<16x384xf32>
    %287 = vector.extract_strided_slice %283 {offsets = [0, 0], sizes = [16, 128], strides = [1, 1]} : vector<16x384xbf16> to vector<16x128xbf16>
    %288 = vector.extract_strided_slice %286 {offsets = [0, 0], sizes = [16, 128], strides = [1, 1]} : vector<16x384xf32> to vector<16x128xf32>
    %289 = arith.extf %287 : vector<16x128xbf16> to vector<16x128xf32>
    %290 = arith.addf %289, %288 : vector<16x128xf32>
    %291 = arith.negf %290 : vector<16x128xf32>
    %292 = math.exp %291 : vector<16x128xf32>
    %cst_103 = arith.constant 1.000000e+00 : f32
    %293 = vector.broadcast %cst_103 : f32 to vector<16x128xf32>
    %294 = arith.addf %293, %292 : vector<16x128xf32>
    %295 = arith.divf %293, %294 : vector<16x128xf32>
    %296 = vector.extract_strided_slice %283 {offsets = [0, 128], sizes = [16, 128], strides = [1, 1]} : vector<16x384xbf16> to vector<16x128xbf16>
    %297 = vector.extract_strided_slice %286 {offsets = [0, 128], sizes = [16, 128], strides = [1, 1]} : vector<16x384xf32> to vector<16x128xf32>
    %298 = arith.extf %296 : vector<16x128xbf16> to vector<16x128xf32>
    %299 = arith.addf %298, %297 : vector<16x128xf32>
    %300 = arith.negf %299 : vector<16x128xf32>
    %301 = math.exp %300 : vector<16x128xf32>
    %cst_104 = arith.constant 1.000000e+00 : f32
    %302 = vector.broadcast %cst_104 : f32 to vector<16x128xf32>
    %303 = arith.addf %302, %301 : vector<16x128xf32>
    %304 = arith.divf %302, %303 : vector<16x128xf32>
    %305 = vector.extract_strided_slice %283 {offsets = [0, 256], sizes = [16, 128], strides = [1, 1]} : vector<16x384xbf16> to vector<16x128xbf16>
    %306 = vector.extract_strided_slice %286 {offsets = [0, 256], sizes = [16, 128], strides = [1, 1]} : vector<16x384xf32> to vector<16x128xf32>
    %307 = vector.broadcast %79 : vector<1x128xf32> to vector<16x128xf32>
    %308 = arith.addf %306, %307 : vector<16x128xf32>
    %309 = arith.mulf %295, %308 : vector<16x128xf32>
    %310 = arith.extf %305 : vector<16x128xbf16> to vector<16x128xf32>
    %311 = arith.addf %310, %309 : vector<16x128xf32>
    %312 = math.tanh %311 : vector<16x128xf32>
    %313 = arith.subf %280, %312 : vector<16x128xf32>
    %314 = arith.mulf %304, %313 : vector<16x128xf32>
    %315 = arith.addf %312, %314 : vector<16x128xf32>
    %316 = vector.broadcast %c5_i32_97 : i32 to vector<16x1xi32>
    %317 = arith.cmpi slt, %316, %78 : vector<16x1xi32>
    %318 = vector.shape_cast %317 : vector<16x1xi1> to vector<16x1xi1>
    %319 = vector.broadcast %318 : vector<16x1xi1> to vector<16x128xi1>
    %320 = arith.select %319, %315, %280 : vector<16x128xi1>, vector<16x128xf32>
    %c6_i32_105 = arith.constant 6 : i32
    %c0_106 = arith.constant 0 : index
    %c0_107 = arith.constant 0 : index
    %321 = vector.load %arg7[%c0_106, %c0_107] : memref<16x128xf32, #tpu.memory_space<vmem>>, vector<16x128xf32>
    tpu.vector_store %arg7[%c0_106, %c0_107], %320 {strides = array<i32>} : memref<16x128xf32, #tpu.memory_space<vmem>>, vector<16x128xf32>,
    return
  }
  func.func @transform_0(%arg0: i32) -> (i32, i32, i32) {
    %c0_i32 = arith.constant 0 : i32
    %c0_i32_0 = arith.constant 0 : i32
    %c0_i32_1 = arith.constant 0 : i32
    return %c0_i32, %arg0, %c0_i32_0 : i32, i32, i32
  }
  func.func @transform_1(%arg0: i32) -> (i32, i32) {
    %c0_i32 = arith.constant 0 : i32
    %c0_i32_0 = arith.constant 0 : i32
    return %arg0, %c0_i32 : i32, i32
  }
  func.func @transform_2(%arg0: i32) -> (i32, i32) {
    %c0_i32 = arith.constant 0 : i32
    %c0_i32_0 = arith.constant 0 : i32
    %c0_i32_1 = arith.constant 0 : i32
    return %c0_i32, %c0_i32_0 : i32, i32
  }
  func.func @transform_3(%arg0: i32) -> (i32, i32) {
    %c0_i32 = arith.constant 0 : i32
    %c0_i32_0 = arith.constant 0 : i32
    %c0_i32_1 = arith.constant 0 : i32
    return %c0_i32, %c0_i32_0 : i32, i32
  }
  func.func @transform_4(%arg0: i32) -> (i32, i32) {
    %c0_i32 = arith.constant 0 : i32
    %c0_i32_0 = arith.constant 0 : i32
    %c0_i32_1 = arith.constant 0 : i32
    return %c0_i32, %c0_i32_0 : i32, i32
  }
  func.func @transform_5(%arg0: i32) -> (i32, i32) {
    %c0_i32 = arith.constant 0 : i32
    %c0_i32_0 = arith.constant 0 : i32
    %c0_i32_1 = arith.constant 0 : i32
    return %c0_i32, %c0_i32_0 : i32, i32
  }
  func.func @transform_6(%arg0: i32) -> (i32, i32) {
    %c0_i32 = arith.constant 0 : i32
    %c0_i32_0 = arith.constant 0 : i32
    return %arg0, %c0_i32 : i32, i32
  }
}

</mosaic_0001>

<bundles_post_ra>
// kernel: rnn_layer_forward.1
= control target key start
LH: loop header
LB: loop body
LE: loop exit
PB: predicated region body
PF: predicated region fallthrough
CT: control target
= control target key end

     0   :  { %vm79_vm0 = vcmask 261120   ;;  %s3304_s2 = inlined_call_operand.vmem [shape: bf16[32,384], index: 2, kind: input, shape index: {}]   ;;  %s3305_s0 = inlined_call_operand.vmem [shape: bf16[6,16,32], index: 0, kind: input, shape index: {}]   ;;  %s3306_s3 = inlined_call_operand.vmem [shape: bf16[128,384], index: 3, kind: input, shape index: {}]   ;;  %s3307_s1 = inlined_call_operand.vmem [shape: s32[16,1], index: 1, kind: input, shape index: {}]   ;;  %s3308_s5 = inlined_call_operand.vmem [shape: f32[1,128], index: 5, kind: input, shape index: {}]   ;;  %s3309_s4 = inlined_call_operand.vmem [shape: f32[1,384], index: 4, kind: input, shape index: {}]   ;;  %s3310_s6 = inlined_call_operand.vmem [shape: f32[16,128], index: 6, kind: output, shape index: {}]  }
   0x1   :  { %v1874_v0 = vld [vmem:[%s3304_s2 + $0x18] sm:$0xf]  ;;  %v2186_v1 = vld [vmem:[%s3304_s2 + $0x20] sm:$0xf0]  ;;  %v1882_v2 = vld [vmem:[%s3304_s2 + $0x20] sm:$0xf] }
   0x2   :  { %v1875_v3 = vor.u32 %v2186_v1, %v1874_v0  ;;  %v2187_v4 = vld [vmem:[%s3304_s2 + $0x28] sm:$0xf0]  ;;  %v1907_v5 = vld [vmem:[%s3304_s2 + $0x18] sm:$0xf]  ;;  %v2193_v6 = vld [vmem:[%s3304_s2 + $0x20] sm:$0xf0] }
   0x3   :  { %v1883_v7 = vor.u32 %v2187_v4, %v1882_v2  ;;  %v1908_v8 = vor.u32 %v2193_v6, %v1907_v5  ;;  %v1862_v9 = vld [vmem:[%s3304_s2] sm:$0xf]  ;;  %v2183_v10 = vld [vmem:[%s3304_s2 + $0x8] sm:$0xf0]  ;;  %v1870_v11 = vld [vmem:[%s3304_s2 + $0x8] sm:$0xf] }
   0x4   :  { %89 = vmatpush.bf16.msra.mxu0 %v1875_v3  ;;  %v1863_v12 = vor.u32 %v2183_v10, %v1862_v9  ;;  %v2184_v13 = vld [vmem:[%s3304_s2 + $0x10] sm:$0xf0]  ;;  %v1895_v14 = vld [vmem:[%s3304_s2] sm:$0xf]  ;;  %v2190_v15 = vld [vmem:[%s3304_s2 + $0x8] sm:$0xf0] }
   0x5   :  { %117 = vmatpush.bf16.msra.mxu2 %v1883_v7  ;;  %198 = vmatpush.bf16.msra.mxu3 %v1908_v8  ;;  %v1871_v16 = vor.u32 %v2184_v13, %v1870_v11  ;;  %v1896_v17 = vor.u32 %v2190_v15, %v1895_v14  ;;  %v2185_v18 = vld [vmem:[%s3304_s2 + $0x1c] sm:$0xf]  ;;  %v1876_v19 = vld [vmem:[%s3304_s2 + $0x24] sm:$0xf0]  ;;  %v2181_v20 = vld [vmem:[%s3305_s0] sm:$0xff] }
   0x6   :  { %v1879_v21 = vor.u32 %v2185_v18, %v1876_v19  ;;  %v2459_v22 = vld [vmem:[%s3305_s0 + $0x8] sm:$0xff]  ;;  %v1940_v23 = vld [vmem:[%s3304_s2 + $0x18] sm:$0xf]  ;;  %v2200_v24 = vld [vmem:[%s3304_s2 + $0x20] sm:$0xf0] }
   0x7   :  { %v1941_v25 = vor.u32 %v2200_v24, %v1940_v23  ;;  %v2182_v26 = vld [vmem:[%s3304_s2 + $0x4] sm:$0xf]  ;;  %v1864_v27 = vld [vmem:[%s3304_s2 + $0xc] sm:$0xf0]  ;;  %v1928_v28 = vld [vmem:[%s3304_s2] sm:$0xf] }
   0x8   :  { %90 = vmatpush.bf16.msra.mxu0 %v1863_v12  ;;  %103 = vmatpush.bf16.msra.mxu1 %v1879_v21  ;;  %v2197_v29 = vld [vmem:[%s3304_s2 + $0x8] sm:$0xf0]  ;;  %v2192_v30 = vld [vmem:[%s3304_s2 + $0x1c] sm:$0xf]  ;;  %v1909_v31 = vld [vmem:[%s3304_s2 + $0x24] sm:$0xf0]  ;;  %v1867_v32 = vor.u32 %v2182_v26, %v1864_v27 }
   0x9   :  { %118 = vmatpush.bf16.msra.mxu2 %v1871_v16  ;;  %199 = vmatpush.bf16.msra.mxu3 %v1896_v17  ;;  %v1912_v33 = vor.u32 %v2192_v30, %v1909_v31  ;;  %v2199_v34 = vld [vmem:[%s3304_s2 + $0x1c] sm:$0xf]  ;;  %v1942_v35 = vld [vmem:[%s3304_s2 + $0x24] sm:$0xf0]  ;;  %v1929_v36 = vor.u32 %v2197_v29, %v1928_v28  ;;  %v2189_v38 = vld [vmem:[%s3304_s2 + $0x4] sm:$0xf] }
   0xa   :  { %v1945_v37 = vor.u32 %v2199_v34, %v1942_v35  ;;  %v1897_v39 = vld [vmem:[%s3304_s2 + $0xc] sm:$0xf0]  ;;  %v2196_v40 = vld [vmem:[%s3304_s2 + $0x4] sm:$0xf]  ;;  %v1915_v42 = vld [vmem:[%s3304_s2 + $0x20] sm:$0xf] }
   0xb   :  { %1884 = vmatmul.msk.bf16.vlgmr.msra.gmra.mxu0 %vm79_vm0, %v2181_v20  ;;  %v1930_v41 = vld [vmem:[%s3304_s2 + $0xc] sm:$0xf0]  ;;  %v2194_v43 = vld [vmem:[%s3304_s2 + $0x28] sm:$0xf0]  ;;  %v2206_v45 = vld [vmem:[%s3304_s2 + $0x1c] sm:$0xf]  ;;  %v1900_v48 = vor.u32 %v2189_v38, %v1897_v39 }
   0xc   :  { %1886 = vmatmul.msk.bf16.vlgmr.msra.gmra.mxu2 %vm79_vm0, %v2181_v20  ;;  %1917 = vmatmul.msk.bf16.vlgmr.msra.gmra.mxu3 %vm79_vm0, %v2459_v22  ;;  %v1916_v44 = vor.u32 %v2194_v43, %v1915_v42  ;;  %v1975_v46 = vld [vmem:[%s3304_s2 + $0x24] sm:$0xf0]  ;;  %v2191_v50 = vld [vmem:[%s3304_s2 + $0x10] sm:$0xf0]  ;;  %v1981_v51 = vld [vmem:[%s3304_s2 + $0x20] sm:$0xf]  ;;  %v1933_v53 = vor.u32 %v2196_v40, %v1930_v41 }
   0xd   :  { %308 = vmatpush.bf16.msrb.mxu2 %v1941_v25  ;;  %v1903_v47 = vld [vmem:[%s3304_s2 + $0x8] sm:$0xf]  ;;  %104 = vmatpush.bf16.msra.mxu1 %v1867_v32  ;;  %v1978_v49 = vor.u32 %v2206_v45, %v1975_v46  ;;  %v2208_v52 = vld [vmem:[%s3304_s2 + $0x28] sm:$0xf0]  ;;  %v2203_v54 = vld [vmem:[%s3304_s2 + $0x4] sm:$0xf] }
   0xe   :  { %212 = vmatpush.bf16.msrb.mxu0 %v1912_v33  ;;  %322 = vmatpush.bf16.msrb.mxu3 %v1945_v37  ;;  %v1963_v55 = vld [vmem:[%s3304_s2 + $0xc] sm:$0xf0]  ;;  %v1948_v56 = vld [vmem:[%s3304_s2 + $0x20] sm:$0xf]  ;;  %v1904_v57 = vor.u32 %v2191_v50, %v1903_v47  ;;  %v1982_v58 = vor.u32 %v2208_v52, %v1981_v51  ;;  %v2201_v59 = vld [vmem:[%s3304_s2 + $0x28] sm:$0xf0] }
   0xf   :  { %v1966_v60 = vor.u32 %v2203_v54, %v1963_v55  ;;  %v1949_v61 = vor.u32 %v2201_v59, %v1948_v56  ;;  %v1969_v62 = vld [vmem:[%s3304_s2 + $0x8] sm:$0xf]  ;;  %v2205_v63 = vld [vmem:[%s3304_s2 + $0x10] sm:$0xf0]  ;;  %v1973_v3 = vld [vmem:[%s3304_s2 + $0x18] sm:$0xf] }
  0x10   :  { %1885 = vmatmul.msk.bf16.vlgmr.msra.gmra.mxu1 %vm79_vm0, %v2181_v20  ;;  %v1936_v0 = vld [vmem:[%s3304_s2 + $0x8] sm:$0xf]  ;;  %v2198_v1 = vld [vmem:[%s3304_s2 + $0x10] sm:$0xf0]  ;;  %v2207_v4 = vld [vmem:[%s3304_s2 + $0x20] sm:$0xf0]  ;;  %v1970_v5 = vor.u32 %v2205_v63, %v1969_v62 }
  0x11   :  { %309 = vmatpush.bf16.msrb.mxu2 %v1929_v36  ;;  %226 = vmatpush.bf16.msrb.mxu1 %v1916_v44  ;;  %v1937_v2 = vor.u32 %v2198_v1, %v1936_v0  ;;  %v1974_v6 = vor.u32 %v2207_v4, %v1973_v3  ;;  %v2014_v7 = vld [vmem:[%s3304_s2 + $0x20] sm:$0xf]  ;;  %v2215_v8 = vld [vmem:[%s3304_s2 + $0x28] sm:$0xf0]  ;;  %v2039_v10 = vld [vmem:[%s3304_s2 + $0x18] sm:$0xf] }
  0x12   :  { %213 = vmatpush.bf16.msrb.mxu0 %v1900_v48  ;;  %323 = vmatpush.bf16.msrb.mxu3 %v1933_v53  ;;  %v1961_v9 = vld [vmem:[%s3304_s2] sm:$0xf]  ;;  %v2221_v11 = vld [vmem:[%s3304_s2 + $0x20] sm:$0xf0]  ;;  %v2204_v12 = vld [vmem:[%s3304_s2 + $0x8] sm:$0xf0]  ;;  %v2015_v17 = vor.u32 %v2215_v8, %v2014_v7 }
  0x13   :  { %v1962_v13 = vor.u32 %v2204_v12, %v1961_v9  ;;  %v2006_v14 = vld [vmem:[%s3304_s2 + $0x18] sm:$0xf]  ;;  %v2195_v15 = vld [vmem:[%s3305_s0 + $0x10] sm:$0xff]  ;;  %v2214_v16 = vld [vmem:[%s3304_s2 + $0x20] sm:$0xf0]  ;;  %v2040_v18 = vor.u32 %v2221_v11, %v2039_v10 }
  0x14   :  { %v2002_v19 = vld [vmem:[%s3304_s2 + $0x8] sm:$0xf]  ;;  %v2212_v20 = vld [vmem:[%s3304_s2 + $0x10] sm:$0xf0]  ;;  %v2027_v21 = vld [vmem:[%s3304_s2] sm:$0xf]  ;;  %v2007_v24 = vor.u32 %v2214_v16, %v2006_v14 }
  0x15   :  { %432 = vmatpush.bf16.msra.mxu2 %v1978_v49  ;;  %227 = vmatpush.bf16.msrb.mxu1 %v1904_v57  ;;  %v2218_v23 = vld [vmem:[%s3304_s2 + $0x8] sm:$0xf0]  ;;  %v1994_v25 = vld [vmem:[%s3304_s2] sm:$0xf]  ;;  %v2003_v27 = vor.u32 %v2212_v20, %v2002_v19  ;;  %v2213_v29 = vld [vmem:[%s3304_s2 + $0x1c] sm:$0xf] }
  0x16   :  { %336 = vmatpush.bf16.msra.mxu0 %v1949_v61  ;;  %446 = vmatpush.bf16.msra.mxu3 %v1982_v58  ;;  %v2211_v26 = vld [vmem:[%s3304_s2 + $0x8] sm:$0xf0]  ;;  %v2028_v28 = vor.u32 %v2218_v23, %v2027_v21  ;;  %v2008_v31 = vld [vmem:[%s3304_s2 + $0x24] sm:$0xf0]  ;;  %v2210_v33 = vld [vmem:[%s3304_s2 + $0x4] sm:$0xf] }
  0x17   :  { %v1995_v30 = vor.u32 %v2211_v26, %v1994_v25  ;;  %v2011_v32 = vor.u32 %v2213_v29, %v2008_v31  ;;  %v1996_v34 = vld [vmem:[%s3304_s2 + $0xc] sm:$0xf0]  ;;  %v2138_v36 = vld [vmem:[%s3306_s3 + $0xa8] sm:$0xf]  ;;  %v2244_v37 = vld [vmem:[%s3306_s3 + $0xac] sm:$0xf] }
  0x18   :  { %v1999_v35 = vor.u32 %v2210_v33, %v1996_v34  ;;  %v2140_v38 = vld [vmem:[%s3306_s3 + $0xb4] sm:$0xf0]  ;;  %v2220_v39 = vld [vmem:[%s3304_s2 + $0x1c] sm:$0xf]  ;;  %v2041_v40 = vld [vmem:[%s3304_s2 + $0x24] sm:$0xf0] }
  0x19   :  { %433 = vmatpush.bf16.msra.mxu2 %v1966_v60  ;;  %418 = vmatpush.bf16.msra.mxu1 %v1974_v6  ;;  %v2202_v41 = vld [vmem:[%s3305_s0 + $0x18] sm:$0xff]  ;;  %v2648_v43 = vor.u32 %v2244_v37, %v2140_v38  ;;  %v2126_v44 = vld [vmem:[%s3306_s3 + $0x90] sm:$0xf]  ;;  %v2241_v46 = vld [vmem:[%s3306_s3 + $0x94] sm:$0xf]  ;;  %v2044_v48 = vor.u32 %v2220_v39, %v2041_v40  ;;  %v2375_v58 = vmov 0  }
  0x1a   :  { %337 = vmatpush.bf16.msra.mxu0 %v1937_v2  ;;  %447 = vmatpush.bf16.msra.mxu3 %v1970_v5  ;;  %v2242_v45 = vld [vmem:[%s3306_s3 + $0x98] sm:$0xf0]  ;;  %v2128_v47 = vld [vmem:[%s3306_s3 + $0x9c] sm:$0xf0]  ;;  %v2217_v49 = vld [vmem:[%s3304_s2 + $0x4] sm:$0xf] }
  0x1b   :  { %1918 = vmatmul.msk.bf16.vlgmr.msrb.gmra.mxu0 %vm79_vm0, %v2459_v22  ;;  %v2029_v50 = vld [vmem:[%s3304_s2 + $0xc] sm:$0xf0]  ;;  %v2673_v51 = vor.u32 %v2242_v45, %v2126_v44  ;;  %v2675_v52 = vor.u32 %v2241_v46, %v2128_v47  ;;  %v2114_v53 = vld [vmem:[%s3306_s3 + $0x78] sm:$0xf]  ;;  %v2239_v54 = vld [vmem:[%s3306_s3 + $0x80] sm:$0xf0]  ;;  %2248 = vset.pattern.permute.xlu0 %v2375_v58 }
  0x1c   :  { %1950 = vmatmul.msk.bf16.vlgmr.msrb.gmra.mxu2 %vm79_vm0, %v2195_v15  ;;  %1951 = vmatmul.msk.bf16.vlgmr.msrb.gmra.mxu3 %vm79_vm0, %v2195_v15  ;;  %v2238_v55 = vld [vmem:[%s3306_s3 + $0x7c] sm:$0xf]  ;;  %v2116_v56 = vld [vmem:[%s3306_s3 + $0x84] sm:$0xf0]  ;;  %v2032_v57 = vor.u32 %v2217_v49, %v2029_v50  ;;  %v2695_v59 = vor.u32 %v2239_v54, %v2114_v53  ;;  %v2102_v61 = vld [vmem:[%s3306_s3 + $0x60] sm:$0xf] }
  0x1d   :  { %419 = vmatpush.bf16.msra.mxu1 %v1962_v13  ;;  %556 = vmatpush.bf16.msrb.mxu2 %v2015_v17  ;;  %v2697_v60 = vor.u32 %v2238_v55, %v2116_v56  ;;  %v2236_v62 = vld [vmem:[%s3306_s3 + $0x68] sm:$0xf0]  ;;  %v2235_v63 = vld [vmem:[%s3306_s3 + $0x64] sm:$0xf]  ;;  %v2104_v0 = vld [vmem:[%s3306_s3 + $0x6c] sm:$0xf0] }
  0x1e   :  { %638 = vmatpush.bf16.msrb.mxu3 %v2040_v18  ;;  %528 = vmatpush.bf16.msrb.mxu0 %v2007_v24  ;;  %v2713_v1 = vor.u32 %v2236_v62, %v2102_v61  ;;  %v2715_v2 = vor.u32 %v2235_v63, %v2104_v0  ;;  %v2090_v3 = vld [vmem:[%s3306_s3 + $0x48] sm:$0xf]  ;;  %v2233_v4 = vld [vmem:[%s3306_s3 + $0x50] sm:$0xf0]  ;;  %v2232_v5 = vld [vmem:[%s3306_s3 + $0x4c] sm:$0xf] }
  0x1f   :  { %2249 = vset.pattern.permute.xlu1 %v2375_v58  ;;  %2250 = vset.pattern.permute.xlu2 %v2375_v58  ;;  %v2092_v6 = vld [vmem:[%s3306_s3 + $0x54] sm:$0xf0]  ;;  %v2209_v7 = vld [vmem:[%s3305_s0 + $0x20] sm:$0xff]  ;;  %v2146_v8 = vld [vmem:[%s3306_s3 + $0xb0] sm:$0xf]  ;;  %v2745_v11 = vor.u32 %v2233_v4, %v2090_v3 }
  0x20   :  { %1919 = vmatmul.msk.bf16.vlgmr.msrb.gmra.mxu1 %vm79_vm0, %v2459_v22  ;;  %v2245_v22 = vld [vmem:[%s3306_s3 + $0xb0] sm:$0xf0]  ;;  %v2246_v9 = vld [vmem:[%s3306_s3 + $0xb8] sm:$0xf0]  ;;  %v2741_v10 = vld [vmem:[%s3305_s0 + $0x28] sm:$0xff]  ;;  %v2747_v12 = vor.u32 %v2232_v5, %v2092_v6 }
  0x21   :  { %557 = vmatpush.bf16.msrb.mxu2 %v2003_v27  ;;  %542 = vmatpush.bf16.msrb.mxu1 %v2011_v32  ;;  %v2646_v42 = vor.u32 %v2245_v22, %v2138_v36  ;;  %v2078_v13 = vld [vmem:[%s3306_s3 + $0x30] sm:$0xf]  ;;  %v2230_v14 = vld [vmem:[%s3306_s3 + $0x38] sm:$0xf0]  ;;  %v2080_v16 = vld [vmem:[%s3306_s3 + $0x3c] sm:$0xf0]  ;;  %v2761_v17 = vor.u32 %v2246_v9, %v2146_v8 }
  0x22   :  { %639 = vmatpush.bf16.msrb.mxu3 %v2028_v28  ;;  %529 = vmatpush.bf16.msrb.mxu0 %v1995_v30  ;;  %v2134_v18 = vld [vmem:[%s3306_s3 + $0x98] sm:$0xf]  ;;  %v2243_v19 = vld [vmem:[%s3306_s3 + $0xa0] sm:$0xf0]  ;;  %v2775_v20 = vor.u32 %v2230_v14, %v2078_v13  ;;  %v2226_v26 = vld [vmem:[%s3306_s3 + $0x1c] sm:$0xf] }
  0x23   :  { %v2066_v23 = vld [vmem:[%s3306_s3 + $0x18] sm:$0xf]  ;;  %v2227_v24 = vld [vmem:[%s3306_s3 + $0x20] sm:$0xf0]  ;;  %v2068_v27 = vld [vmem:[%s3306_s3 + $0x24] sm:$0xf0]  ;;  %v2797_v28 = vor.u32 %v2243_v19, %v2134_v18 }
  0x24   :  { %v2788_v25 = vld [vmem:[%s3307_s1] sm:$0xff]  ;;  %v2240_v30 = vld [vmem:[%s3306_s3 + $0x88] sm:$0xf0]  ;;  %v2815_v33 = vor.u32 %v2227_v24, %v2066_v23  ;;  %v2817_v34 = vor.u32 %v2226_v26, %v2068_v27  ;;  %v2056_v37 = vld [vmem:[%s3306_s3 + $0xc] sm:$0xf0] }
  0x25   :  { %543 = vmatpush.bf16.msrb.mxu1 %v1999_v35  ;;  %vm1001_vm1 = vcmp.gt.s32.totalorder %v2788_v25, 0  ;;  %v2122_v29 = vld [vmem:[%s3306_s3 + $0x80] sm:$0xf]  ;;  %v2810_v32 = vld [vmem:[%s3307_s1 + $0x8] sm:$0xff]  ;;  %v2223_v22 = vld [vmem:[%s3306_s3 + $0x4] sm:$0xf] }
  0x26   :  { %v1003_v31 = vsel %vm1001_vm1, 1, %v2375_v58  ;;  %v2054_v35 = vld [vmem:[%s3306_s3] sm:$0xf]  ;;  %v2224_v36 = vld [vmem:[%s3306_s3 + $0x8] sm:$0xf0]  ;;  %v2832_v38 = vor.u32 %v2240_v30, %v2122_v29  ;;  %vm1002_vm2 = vcmp.gt.s32.totalorder %v2810_v32, 0  ;;  %v2845_v44 = vor.u32 %v2223_v22, %v2056_v37 }
  0x27   :  { %1006 = vperm.xlu0 %2248, %v1003_v31   ;;  %v2110_v39 = vld [vmem:[%s3306_s3 + $0x68] sm:$0xf]  ;;  %v2237_v40 = vld [vmem:[%s3306_s3 + $0x70] sm:$0xf0]  ;;  %v1004_v45 = vsel %vm1002_vm2, 1, %v2375_v58  ;;  %vm1502_vm3 = vcmp.gt.s32.totalorder %v2788_v25, 3 }
  0x28   :  { %v2849_v46 = vor.u32 %v2237_v40, %v2110_v39  ;;  %v2098_v47 = vld [vmem:[%s3306_s3 + $0x50] sm:$0xf]  ;;  %v2086_v50 = vld [vmem:[%s3306_s3 + $0x38] sm:$0xf]  ;;  %v2231_v53 = vld [vmem:[%s3306_s3 + $0x40] sm:$0xf0] }
  0x29   :  { %v1504_v54 = vsel %vm1502_vm3, 1, %v2375_v58  ;;  %v2877_v55 = vor.u32 %v2231_v53, %v2086_v50  ;;  %v2074_v56 = vld [vmem:[%s3306_s3 + $0x20] sm:$0xf]  ;;  %v2062_v62 = vld [vmem:[%s3306_s3 + $0x8] sm:$0xf]  ;;  %vm1670_vm4 = vcmp.gt.s32.totalorder %v2810_v32, 4 }
  0x2a   :  { %v2225_v63 = vld [vmem:[%s3306_s3 + $0x10] sm:$0xf0]  ;;  %v1672_v3 = vsel %vm1670_vm4, 1, %v2375_v58  ;;  %v34_v4 = vld [vmem:[%s3309_s4] sm:$0x7]  ;;  %vm1168_vm7 = vcmp.gt.s32.totalorder %v2788_v25, 1 }
  0x2b   :  { %1952 = vmatmul.msk.bf16.vlgmr.msra.gmra.mxu0 %vm79_vm0, %v2195_v15  ;;  %v2229_v15 = vld [vmem:[%s3306_s3 + $0x34] sm:$0xf]  ;;  %v2899_v0 = vor.u32 %v2225_v63, %v2062_v62  ;;  %v36_v5 = vperm.slane %v34_v4, 0  ;;  %v38_v9 = vperm.slane %v34_v4, 2  ;;  %v144_v23 = vld [vmem:[%s3309_s4] sm:$0x7] }
  0x2c   :  { %1984 = vmatmul.msk.bf16.vlgmr.msra.gmra.mxu2 %vm79_vm0, %v2202_v41  ;;  %1985 = vmatmul.msk.bf16.vlgmr.msra.gmra.mxu3 %vm79_vm0, %v2202_v41  ;;  %v2777_v21 = vor.u32 %v2229_v15, %v2080_v16  ;;  %v146_v27 = vperm.slane %v144_v23, 0  ;;  %v147_v31 = vperm.slane %v144_v23, 1  ;;  %v148_v53 = vperm.slane %v144_v23, 2 }
  0x2d   :  { %850 = vmatpush.bf16.msra.mxu2 %v2646_v42  ;;  %864 = vmatpush.bf16.msra.mxu3 %v2648_v43  ;;  %vm1169_vm10 = vcmp.gt.s32.totalorder %v2810_v32, 1  ;;  %vm1503_vm2 = vcmp.gt.s32.totalorder %v2810_v32, 3 }
  0x2e   :  { %652 = vmatpush.bf16.msra.mxu0 %v2044_v48  ;;  %v2234_v48 = vld [vmem:[%s3306_s3 + $0x58] sm:$0xf0] }
  0x2f   :  { %1009 = vperm.xlu0 %2248, %v1004_v45   ;;  %v2860_v49 = vor.u32 %v2234_v48, %v2098_v47  ;;  %v254_v48 = vld [vmem:[%s3309_s4] sm:$0x7] }
  0x30   :  { %1983 = vmatmul.msk.bf16.vlgmr.msra.gmra.mxu1 %vm79_vm0, %v2202_v41  ;;  %v2843_v41 = vor.u32 %v2224_v36, %v2054_v35 }
  0x31   :  { %851 = vmatpush.bf16.msra.mxu2 %v2673_v51  ;;  %865 = vmatpush.bf16.msra.mxu3 %v2675_v52 }
  0x32   :  { %653 = vmatpush.bf16.msra.mxu0 %v2032_v57  ;;  %v2228_v57 = vld [vmem:[%s3306_s3 + $0x28] sm:$0xf0] }
  0x33   :  { %v2888_v61 = vor.u32 %v2228_v57, %v2074_v56  ;;  %v256_v56 = vperm.slane %v254_v48, 0  ;;  %v257_v57 = vperm.slane %v254_v48, 1 }
  0x35   :  { %852 = vmatpush.bf16.msra.mxu2 %v2695_v59  ;;  %866 = vmatpush.bf16.msra.mxu3 %v2697_v60 }
  0x37   :  { %1507 = vperm.xlu0 %2248, %v1504_v54  }
  0x39   :  { %853 = vmatpush.bf16.msra.mxu2 %v2713_v1  ;;  %867 = vmatpush.bf16.msra.mxu3 %v2715_v2 }
  0x3b   :  { %2016 = vmatmul.msk.bf16.vlgmr.msrb.gmra.mxu0 %vm79_vm0, %v2209_v7 }
  0x3c   :  { %2018 = vmatmul.msk.bf16.vlgmr.msrb.gmra.mxu2 %vm79_vm0, %v2209_v7  ;;  %2049 = vmatmul.msk.bf16.vlgmr.msrb.gmra.mxu3 %vm79_vm0, %v2741_v10 }
  0x3d   :  { %854 = vmatpush.bf16.msra.mxu2 %v2745_v11  ;;  %868 = vmatpush.bf16.msra.mxu3 %v2747_v12 }
  0x3e   :  { %878 = vmatpush.bf16.msrb.mxu0 %v2761_v17 }
  0x3f   :  { %1677 = vperm.xlu0 %2248, %v1672_v3  }
  0x40   :  { %2017 = vmatmul.msk.bf16.vlgmr.msrb.gmra.mxu1 %vm79_vm0, %v2209_v7  ;;  %v37_v7 = vperm.slane %v34_v4, 1 }
  0x41   :  { %855 = vmatpush.bf16.msra.mxu2 %v2775_v20  ;;  %869 = vmatpush.bf16.msra.mxu3 %v2777_v21 }
  0x42   :  { %879 = vmatpush.bf16.msrb.mxu0 %v2797_v28 }
  0x45   :  { %856 = vmatpush.bf16.msra.mxu2 %v2815_v33  ;;  %870 = vmatpush.bf16.msra.mxu3 %v2817_v34 }
  0x46   :  { %880 = vmatpush.bf16.msrb.mxu0 %v2832_v38 }
  0x49   :  { %857 = vmatpush.bf16.msra.mxu2 %v2843_v41  ;;  %871 = vmatpush.bf16.msra.mxu3 %v2845_v44 }
  0x4a   :  { %881 = vmatpush.bf16.msrb.mxu0 %v2849_v46 }
  0x4b   :  { %2050 = vmatmul.msk.bf16.vlgmr.msra.gmra.mxu0 %vm79_vm0, %v2741_v10 }
  0x4c   :  { %858 = vmatmul.bf16.vlgmr.msra.gmra.mxu2 %v2375_v58  ;;  %872 = vmatmul.bf16.vlgmr.msra.gmra.mxu3 %v2375_v58 }
  0x4d   :  { %1034 = vmatpush.bf16.msrb.mxu2 %v2648_v43  ;;  %1048 = vmatpush.bf16.msrb.mxu3 %v2761_v17 }
  0x4e   :  { %882 = vmatpush.bf16.msrb.mxu0 %v2860_v49 }
  0x51   :  { %1035 = vmatpush.bf16.msrb.mxu2 %v2675_v52  ;;  %1049 = vmatpush.bf16.msrb.mxu3 %v2797_v28 }
  0x52   :  { %883 = vmatpush.bf16.msrb.mxu0 %v2877_v55 }
  0x55   :  { %1036 = vmatpush.bf16.msrb.mxu2 %v2697_v60  ;;  %1050 = vmatpush.bf16.msrb.mxu3 %v2832_v38 }
  0x56   :  { %884 = vmatpush.bf16.msrb.mxu0 %v2888_v61 }
  0x59   :  { %1037 = vmatpush.bf16.msrb.mxu2 %v2715_v2  ;;  %1051 = vmatpush.bf16.msrb.mxu3 %v2849_v46 }
  0x5a   :  { %885 = vmatpush.bf16.msrb.mxu0 %v2899_v0 }
  0x5d   :  { %1038 = vmatpush.bf16.msrb.mxu2 %v2747_v12  ;;  %1052 = vmatpush.bf16.msrb.mxu3 %v2860_v49 }
  0x5e   :  { %1187 = vmatpush.bf16.msra.mxu0 %v2646_v42 }
  0x5f   :  { %886 = vmatmul.bf16.vlgmr.msrb.gmra.mxu0 %v2375_v58 }
  0x61   :  { %1039 = vmatpush.bf16.msrb.mxu2 %v2777_v21  ;;  %1053 = vmatpush.bf16.msrb.mxu3 %v2877_v55 }
  0x62   :  { %1188 = vmatpush.bf16.msra.mxu0 %v2673_v51 }
  0x65   :  { %1040 = vmatpush.bf16.msrb.mxu2 %v2817_v34  ;;  %1054 = vmatpush.bf16.msrb.mxu3 %v2888_v61 }
  0x66   :  { %1189 = vmatpush.bf16.msra.mxu0 %v2695_v59 }
  0x69   :  { %1041 = vmatpush.bf16.msrb.mxu2 %v2845_v44  ;;  %1055 = vmatpush.bf16.msrb.mxu3 %v2899_v0 }
  0x6a   :  { %1190 = vmatpush.bf16.msra.mxu0 %v2713_v1 }
  0x6d   :  { %1215 = vmatpush.bf16.msra.mxu2 %v2761_v17  ;;  %1354 = vmatpush.bf16.msra.mxu3 %v2646_v42 }
  0x6e   :  { %1191 = vmatpush.bf16.msra.mxu0 %v2745_v11 }
  0x71   :  { %1216 = vmatpush.bf16.msra.mxu2 %v2797_v28  ;;  %1355 = vmatpush.bf16.msra.mxu3 %v2673_v51 }
  0x72   :  { %1192 = vmatpush.bf16.msra.mxu0 %v2775_v20 }
  0x75   :  { %1217 = vmatpush.bf16.msra.mxu2 %v2832_v38  ;;  %1356 = vmatpush.bf16.msra.mxu3 %v2695_v59 }
  0x76   :  { %1193 = vmatpush.bf16.msra.mxu0 %v2815_v33 }
  0x79   :  { %1218 = vmatpush.bf16.msra.mxu2 %v2849_v46  ;;  %1357 = vmatpush.bf16.msra.mxu3 %v2713_v1 }
  0x7a   :  { %1194 = vmatpush.bf16.msra.mxu0 %v2843_v41 }
  0x7d   :  { %1219 = vmatpush.bf16.msra.mxu2 %v2860_v49  ;;  %1358 = vmatpush.bf16.msra.mxu3 %v2745_v11 }
  0x7e   :  { %1368 = vmatpush.bf16.msrb.mxu0 %v2648_v43 }
  0x81   :  { %1220 = vmatpush.bf16.msra.mxu2 %v2877_v55  ;;  %1359 = vmatpush.bf16.msra.mxu3 %v2775_v20 }
  0x82   :  { %1369 = vmatpush.bf16.msrb.mxu0 %v2675_v52 }
  0x85   :  { %1221 = vmatpush.bf16.msra.mxu2 %v2888_v61  ;;  %1360 = vmatpush.bf16.msra.mxu3 %v2815_v33 }
  0x86   :  { %1370 = vmatpush.bf16.msrb.mxu0 %v2697_v60 }
  0x88   :  { %v92_v6 = vpop.f32.mrf.mxu0 }
  0x89   :  { %1222 = vmatpush.bf16.msra.mxu2 %v2899_v0  ;;  %1361 = vmatpush.bf16.msra.mxu3 %v2843_v41  ;;  %v93_v8 = vadd.f32 %v92_v6, %v36_v5 }
  0x8a   :  { %1371 = vmatpush.bf16.msrb.mxu0 %v2715_v2 }
  0x8d   :  { %v106_v13 = vpop.f32.mrf.mxu1 }
  0x8e   :  { %1372 = vmatpush.bf16.msrb.mxu0 %v2747_v12  ;;  %v107_v14 = vadd.f32 %v106_v13, %v37_v7 }
  0x8f   :  { %v120_v15 = vpop.f32.mrf.mxu2  ;;  %v201_v16 = vpop.f32.mrf.mxu3 }
  0x90   :  { %v2948_v18 = vpack.c.bf16 %v107_v14, %v93_v8  ;;  %v121_v19 = vadd.f32 %v120_v15, %v38_v9  ;;  %v94_v24 = vpop.f32.mrf.mxu0  ;;  %v202_v36 = vadd.f32 %v201_v16, %v146_v27 }
  0x91   :  { %v95_v29 = vadd.f32 %v94_v24, %v36_v5 }
  0x92   :  { %1373 = vmatpush.bf16.msrb.mxu0 %v2777_v21  ;;  %v126_v26 = vpack.c.bf16 %v121_v19, %v121_v19  ;;  %v258_v19 = vperm.slane %v254_v48, 2 }
  0x94   :  { %130 = vst [vmem:[#allocation2 + $0x8] sm:$0xf] %v126_v26 }
  0x95   :  { %v108_v30 = vpop.f32.mrf.mxu1 }
  0x96   :  { %1374 = vmatpush.bf16.msrb.mxu0 %v2817_v34  ;;  %v109_v35 = vadd.f32 %v108_v30, %v37_v7 }
  0x97   :  { %v122_v22 = vpop.f32.mrf.mxu2  ;;  %v203_v37 = vpop.f32.mrf.mxu3 }
  0x98   :  { %v2955_v39 = vpack.c.bf16 %v109_v35, %v95_v29  ;;  %v123_v40 = vadd.f32 %v122_v22, %v38_v9  ;;  %v215_v45 = vpop.f32.mrf.mxu0  ;;  %v204_v9 = vadd.f32 %v203_v37, %v146_v27  ;;  %v364_v29 = vld [vmem:[%s3309_s4] sm:$0x7] }
  0x99   :  { %v216_v47 = vadd.f32 %v215_v45, %v147_v31  ;;  %v366_v37 = vperm.slane %v364_v29, 0  ;;  %v367_v45 = vperm.slane %v364_v29, 1 }
  0x9a   :  { %1375 = vmatpush.bf16.msrb.mxu0 %v2845_v44  ;;  %v128_v50 = vpack.c.bf16 %v123_v40, %v123_v40 }
  0x9b   :  { %v2960_v54 = vpack.c.bf16 %v216_v47, %v202_v36  ;;  %v368_v47 = vperm.slane %v364_v29, 2 }
  0x9c   :  { %132 = vst [vmem:[#allocation2 + $0x14] sm:$0xf] %v128_v50 }
  0x9d   :  { %v229_v62 = vpop.f32.mrf.mxu1 }
  0x9e   :  { %v230_v63 = vadd.f32 %v229_v62, %v148_v53 }
  0x9f   :  { %v311_v3 = vpop.f32.mrf.mxu2  ;;  %v325_v4 = vpop.f32.mrf.mxu3 }
  0xa0   :  { %v235_v5 = vpack.c.bf16 %v230_v63, %v230_v63  ;;  %v312_v6 = vadd.f32 %v311_v3, %v256_v56  ;;  %v326_v7 = vadd.f32 %v325_v4, %v257_v57  ;;  %v217_v8 = vpop.f32.mrf.mxu0 }
  0xa1   :  { %v218_v13 = vadd.f32 %v217_v8, %v147_v31 }
  0xa2   :  { %240 = vst [vmem:[#allocation2 + $0x20] sm:$0xf] %v235_v5  ;;  %v2962_v14 = vpack.c.bf16 %v326_v7, %v312_v6 }
  0xa3   :  { %v2964_v15 = vpack.c.bf16 %v218_v13, %v204_v9 }
  0xa5   :  { %v231_v16 = vpop.f32.mrf.mxu1 }
  0xa6   :  { %v232_v23 = vadd.f32 %v231_v16, %v148_v53  ;;  %v474_v16 = vld [vmem:[%s3309_s4] sm:$0x7] }
  0xa7   :  { %v313_v24 = vpop.f32.mrf.mxu2  ;;  %v327_v26 = vpop.f32.mrf.mxu3 }
  0xa8   :  { %v237_v30 = vpack.c.bf16 %v232_v23, %v232_v23  ;;  %v314_v35 = vadd.f32 %v313_v24, %v256_v56  ;;  %v328_v36 = vadd.f32 %v327_v26, %v257_v57  ;;  %v339_v22 = vpop.f32.mrf.mxu0  ;;  %v476_v26 = vperm.slane %v474_v16, 0 }
  0xa9   :  { %v340_v27 = vadd.f32 %v339_v22, %v258_v19  ;;  %v478_v22 = vperm.slane %v474_v16, 2 }
  0xaa   :  { %242 = vst [vmem:[#allocation2 + $0x2c] sm:$0xf] %v237_v30  ;;  %v2969_v31 = vpack.c.bf16 %v328_v36, %v314_v35  ;;  %v477_v35 = vperm.slane %v474_v16, 1 }
  0xab   :  { %v345_v40 = vpack.c.bf16 %v340_v27, %v340_v27 }
  0xad   :  { %350 = vst [vmem:[#allocation2 + $0x38] sm:$0xf] %v345_v40  ;;  %v421_v48 = vpop.f32.mrf.mxu1 }
  0xae   :  { %v422_v50 = vadd.f32 %v421_v48, %v366_v37 }
  0xaf   :  { %v435_v53 = vpop.f32.mrf.mxu2  ;;  %v449_v62 = vpop.f32.mrf.mxu3 }
  0xb0   :  { %v436_v63 = vadd.f32 %v435_v53, %v367_v45  ;;  %v450_v3 = vadd.f32 %v449_v62, %v368_v47  ;;  %v341_v4 = vpop.f32.mrf.mxu0  ;;  %v2977_v53 = vld [vmem:[%s3309_s4] sm:$0x7] }
  0xb1   :  { %v342_v5 = vadd.f32 %v341_v4, %v258_v19  ;;  %v587_v4 = vperm.slane %v2977_v53, 1 }
  0xb2   :  { %v454_v56 = vpack.c.bf16 %v436_v63, %v422_v50  ;;  %v455_v57 = vpack.c.bf16 %v450_v3, %v450_v3  ;;  %v586_v63 = vperm.slane %v2977_v53, 0 }
  0xb3   :  { %v347_v6 = vpack.c.bf16 %v342_v5, %v342_v5 }
  0xb4   :  { %459 = vst [vmem:[#allocation2 + $0x48] sm:$0xff] %v454_v56  ;;  %v2047_v56 = vld [vmem:[%s3304_s2 + $0x20] sm:$0xf] }
  0xb5   :  { %460 = vst [vmem:[#allocation2 + $0x50] sm:$0xf] %v455_v57  ;;  %v423_v7 = vpop.f32.mrf.mxu1  ;;  %v2222_v57 = vld [vmem:[%s3304_s2 + $0x28] sm:$0xf0] }
  0xb6   :  { %352 = vst [vmem:[#allocation2 + $0x44] sm:$0xf] %v347_v6  ;;  %v424_v8 = vadd.f32 %v423_v7, %v366_v37  ;;  %v2048_v7 = vor.u32 %v2222_v57, %v2047_v56  ;;  %v937_v57 = vrot.slane %v2955_v39, 4 }
  0xb7   :  { %v437_v9 = vpop.f32.mrf.mxu2  ;;  %v451_v13 = vpop.f32.mrf.mxu3 }
  0xb8   :  { %v438_v23 = vadd.f32 %v437_v9, %v367_v45  ;;  %v452_v24 = vadd.f32 %v451_v13, %v368_v47  ;;  %v531_v29 = vpop.f32.mrf.mxu0  ;;  %666 = vmatpush.bf16.msra.mxu1 %v2048_v7 }
  0xb9   :  { %v532_v36 = vadd.f32 %v531_v29, %v476_v26  ;;  %v2035_v29 = vld [vmem:[%s3304_s2 + $0x8] sm:$0xf] }
  0xba   :  { %v456_v30 = vpack.c.bf16 %v438_v23, %v424_v8  ;;  %v457_v19 = vpack.c.bf16 %v452_v24, %v452_v24 }
  0xbc   :  { %461 = vst [vmem:[#allocation2 + $0x54] sm:$0xff] %v456_v30  ;;  %v2219_v30 = vld [vmem:[%s3304_s2 + $0x10] sm:$0xf0] }
  0xbd   :  { %462 = vst [vmem:[#allocation2 + $0x5c] sm:$0xf] %v457_v19  ;;  %v545_v27 = vpop.f32.mrf.mxu1 }
  0xbe   :  { %v546_v40 = vadd.f32 %v545_v27, %v477_v35 }
  0xbf   :  { %v559_v37 = vpop.f32.mrf.mxu2  ;;  %v641_v48 = vpop.f32.mrf.mxu3 }
  0xc0   :  { %v560_v50 = vadd.f32 %v559_v37, %v478_v22  ;;  %v533_v45 = vpop.f32.mrf.mxu0  ;;  %v564_v47 = vpack.c.bf16 %v546_v40, %v532_v36  ;;  %v642_v8 = vadd.f32 %v641_v48, %v586_v63  ;;  %v2036_v36 = vor.u32 %v2219_v30, %v2035_v29 }
  0xc1   :  { %v534_v3 = vadd.f32 %v533_v45, %v476_v26 }
  0xc2   :  { %v565_v62 = vpack.c.bf16 %v560_v50, %v560_v50  ;;  %569 = vst [vmem:[#allocation2 + $0x60] sm:$0xff] %v564_v47  ;;  %667 = vmatpush.bf16.msra.mxu1 %v2036_v36 }
  0xc4   :  { %570 = vst [vmem:[#allocation2 + $0x68] sm:$0xf] %v565_v62 }
  0xc5   :  { %v547_v5 = vpop.f32.mrf.mxu1  ;;  %2051 = vmatmul.msk.bf16.vlgmr.msra.gmra.mxu1 %vm79_vm0, %v2741_v10  ;;  %v941_v10 = vunpack.c.l.bf16 %v937_v57  ;;  %v687_v57 = vld [vmem:[#allocation2 + $0x8] sm:$0xf] }
  0xc6   :  { %v548_v6 = vadd.f32 %v547_v5, %v477_v35  ;;  %v936_v35 = vrot.slane %v2948_v18, 4  ;;  %1020 = vmatpush.bf16.msrb.mxu1 %v2646_v42 }
  0xc7   :  { %v561_v9 = vpop.f32.mrf.mxu2  ;;  %v643_v13 = vpop.f32.mrf.mxu3 }
  0xc8   :  { %v562_v16 = vadd.f32 %v561_v9, %v478_v22  ;;  %v655_v23 = vpop.f32.mrf.mxu0  ;;  %v566_v24 = vpack.c.bf16 %v548_v6, %v534_v3  ;;  %v892_v22 = vunpack.c.l.bf16 %v2948_v18  ;;  %v940_v40 = vunpack.c.l.bf16 %v936_v35 }
  0xc9   :  { %v656_v26 = vadd.f32 %v655_v23, %v587_v4  ;;  %v644_v62 = vadd.f32 %v643_v13, %v586_v63  ;;  %v893_v18 = vunpack.c.l.bf16 %v2955_v39 }
  0xca   :  { %v567_v19 = vpack.c.bf16 %v562_v16, %v562_v16  ;;  %571 = vst [vmem:[#allocation2 + $0x6c] sm:$0xff] %v566_v24  ;;  %1021 = vmatpush.bf16.msrb.mxu1 %v2673_v51 }
  0xcb   :  { %v674_v27 = vpack.c.bf16 %v656_v26, %v642_v8 }
  0xcc   :  { %572 = vst [vmem:[#allocation2 + $0x74] sm:$0xf] %v567_v19 }
  0xcd   :  { %679 = vst [vmem:[#allocation2 + $0x78] sm:$0xff] %v674_v27 }
  0xce   :  { %1022 = vmatpush.bf16.msrb.mxu1 %v2695_v59 }
  0xcf   :  { %v859_v37 = vpop.f32.mrf.mxu2  ;;  %v873_v48 = vpop.f32.mrf.mxu3 }
  0xd0   :  { %v894_v50 = vadd.f32 %v892_v22, %v859_v37  ;;  %v942_v45 = vadd.f32 %v940_v40, %v873_v48  ;;  %v657_v47 = vpop.f32.mrf.mxu0  ;;  %v3016_v40 = vld [vmem:[%s3308_s5] ss:$0 sm:$0xff] }
  0xd1   :  { %v658_v3 = vadd.f32 %v657_v47, %v587_v4 }
  0xd2   :  { %v2148_v5 = vmul.f32 -1.442695, %v894_v50  ;;  %v2150_v56 = vmul.f32 -1.442695, %v942_v45  ;;  %1023 = vmatpush.bf16.msrb.mxu1 %v2713_v1 }
  0xd3   :  { %v676_v6 = vpack.c.bf16 %v658_v3, %v644_v62 }
  0xd4   :  { %2252 = vpow2.f32 %v2148_v5 }
  0xd5   :  { %2254 = vpow2.f32 %v2150_v56  ;;  %681 = vst [vmem:[#allocation2 + $0x84] sm:$0xff] %v676_v6 }
  0xd6   :  { %1024 = vmatpush.bf16.msrb.mxu1 %v2745_v11 }
  0xd7   :  { %v861_v7 = vpop.f32.mrf.mxu2  ;;  %v875_v8 = vpop.f32.mrf.mxu3 }
  0xd8   :  { %v895_v9 = vadd.f32 %v893_v18, %v861_v7  ;;  %v943_v63 = vadd.f32 %v941_v10, %v875_v8  ;;  %v1170_v18 = vsel %vm1168_vm7, 1, %v2375_v58 }
  0xd9   :  { %1173 = vperm.xlu1 %2249, %v1170_v18  }
  0xda   :  { %v2253_v4 = vpop.eup %2252  ;;  %v2149_v13 = vmul.f32 -1.442695, %v895_v9  ;;  %v2151_v24 = vmul.f32 -1.442695, %v943_v63  ;;  %1025 = vmatpush.bf16.msrb.mxu1 %v2775_v20 }
  0xdb   :  { %v2255_v16 = vpop.eup %2254  ;;  %v902_v23 = vadd.f32 1.0, %v2253_v4  ;;  %v989_v4 = vunpack.c.l.bf16 %v687_v57 }
  0xdc   :  { %v3003_v26 = vadd.f32 1.0, %v2255_v16  ;;  %2256 = vpow2.f32 %v2149_v13  ;;  %v887_v48 = vpop.f32.mrf.mxu0 }
  0xdd   :  { %2258 = vrcp.f32 %v902_v23  ;;  %v915_v50 = vand.u32 2147483648, %v902_v23  ;;  %v913_v47 = vand.u32 2147483647, %v902_v23  ;;  %vm909_vm6 = vweird.f32 %v902_v23 }
  0xde   :  { %2260 = vrcp.f32 %v3003_v26  ;;  %1026 = vmatpush.bf16.msrb.mxu1 %v2815_v33  ;;  %v985_v3 = vadd.f32 %v3016_v40, %v887_v48  ;;  %vm957_vm0 = vweird.f32 %v3003_v26 }
  0xdf   :  { %2262 = vpow2.f32 %v2151_v24  ;;  %v916_v6 = vor.u32 1.1754944e-38, %v915_v50  ;;  %vm914_vm9 = vcmp.eq.f32.partialorder %v913_v47, 8.507059e+37 }
  0xe2   :  { %v2257_v39 = vpop.eup %2256  ;;  %1027 = vmatpush.bf16.msrb.mxu1 %v2843_v41 }
  0xe3   :  { %v2259_v29 = vpop.eup %2258  ;;  %v903_v30 = vadd.f32 1.0, %v2257_v39 }
  0xe4   :  { %v3008_v19 = vpop.eup %2260  ;;  %v905_v35 = vmul.f32 %v2259_v29, %v902_v23  ;;  %vm910_vm5 = vweird.f32 %v2259_v29 }
  0xe5   :  { %v2263_v36 = vpop.eup %2262  ;;  %2264 = vrcp.f32 %v903_v30  ;;  %v953_v37 = vmul.f32 %v3008_v19, %v3003_v26  ;;  %vm911_vm8 = vmor %vm909_vm6, %vm910_vm5  ;;  %v930_v24 = vand.u32 2147483648, %v903_v30  ;;  %vm924_vm12 = vweird.f32 %v903_v30 }
  0xe6   :  { %v3011_v27 = vadd.f32 1.0, %v2263_v36  ;;  %v906_v22 = vsub.f32 1.0, %v905_v35  ;;  %1201 = vmatpush.bf16.msra.mxu1 %v2648_v43  ;;  %v928_v35 = vand.u32 2147483647, %v903_v30  ;;  %v889_v36 = vpop.f32.mrf.mxu0  ;;  %vm958_vm13 = vweird.f32 %v3008_v19 }
  0xe7   :  { %v954_v56 = vsub.f32 1.0, %v953_v37  ;;  %v931_v47 = vor.u32 1.1754944e-38, %v930_v24  ;;  %vm959_vm1 = vmor %vm957_vm0, %vm958_vm13  ;;  %vm1335_vm0 = vcmp.gt.s32.totalorder %v2788_v25, 2 }
  0xe8   :  { %2266 = vrcp.f32 %v3011_v27  ;;  %v907_v45 = vmul.f32 %v2259_v29, %v906_v22  ;;  %v1171_v22 = vsel %vm1169_vm10, 1, %v2375_v58  ;;  %vm929_vm15 = vcmp.eq.f32.partialorder %v928_v35, 8.507059e+37 }
  0xe9   :  { %v955_v23 = vmul.f32 %v3008_v19, %v954_v56  ;;  %v986_v56 = vadd.f32 %v3016_v40, %v889_v36  ;;  %1176 = vperm.xlu1 %2249, %v1171_v22   ;;  %vm972_vm6 = vweird.f32 %v3011_v27 }
  0xea   :  { %v908_v62 = vadd.f32 %v2259_v29, %v907_v45  ;;  %1202 = vmatpush.bf16.msra.mxu1 %v2675_v52  ;;  %v689_v45 = vld [vmem:[#allocation2 + $0x14] sm:$0xf] }
  0xeb   :  { %v2265_v5 = vpop.eup %2264  ;;  %v956_v50 = vadd.f32 %v3008_v19, %v955_v23  ;;  %v990_v18 = vunpack.c.l.bf16 %v689_v45 }
  0xec   :  { %v912_v10 = vsel %vm911_vm8, %v2259_v29, %v908_v62  ;;  %v920_v7 = vmul.f32 %v2265_v5, %v903_v30  ;;  %vm925_vm11 = vweird.f32 %v2265_v5  ;;  %v963_v62 = vand.u32 2147483648, %v3003_v26 }
  0xed   :  { %v917_v8 = vsel %vm914_vm9, %v916_v6, %v912_v10  ;;  %vm926_vm14 = vmor %vm924_vm12, %vm925_vm11  ;;  %v961_v30 = vand.u32 2147483647, %v3003_v26  ;;  %v960_v10 = vsel %vm959_vm1, %v3008_v19, %v956_v50  ;;  %v1007_v26 = vpop.permute.xlu0 %1006  ;;  %v978_v19 = vand.u32 2147483648, %v3011_v27 }
  0xee   :  { %v3026_v9 = vpop.eup %2266  ;;  %v987_v63 = vmul.f32 %v985_v3, %v917_v8  ;;  %v921_v13 = vsub.f32 1.0, %v920_v7  ;;  %1203 = vmatpush.bf16.msra.mxu1 %v2697_v60  ;;  %v964_v8 = vor.u32 1.1754944e-38, %v963_v62  ;;  %vm1011_vm5 = vcmp.eq.s32.totalorder %v1007_v26, 1 }
  0xef   :  { %v968_v16 = vmul.f32 %v3026_v9, %v3011_v27  ;;  %vm962_vm3 = vcmp.eq.f32.partialorder %v961_v30, 8.507059e+37  ;;  %vm973_vm4 = vweird.f32 %v3026_v9  ;;  %vm1836_vm8 = vcmp.gt.s32.totalorder %v2788_v25, 5 }
  0xf0   :  { %v991_v39 = vadd.f32 %v989_v4, %v987_v63  ;;  %v922_v29 = vmul.f32 %v2265_v5, %v921_v13  ;;  %v1505_v13 = vsel %vm1503_vm2, 1, %v2375_v58  ;;  %vm974_vm7 = vmor %vm972_vm6, %vm973_vm4  ;;  %v1838_v50 = vsel %vm1836_vm8, 1, %v2375_v58 }
  0xf1   :  { %v969_v48 = vsub.f32 1.0, %v968_v16  ;;  %v965_v16 = vsel %vm962_vm3, %v964_v8, %v960_v10  ;;  %1510 = vperm.xlu1 %2249, %v1505_v13   ;;  %vm1336_vm2 = vcmp.gt.s32.totalorder %v2810_v32, 2 }
  0xf2   :  { %2268 = vtanh.f32 %v991_v39  ;;  %v923_v37 = vadd.f32 %v2265_v5, %v922_v29  ;;  %1204 = vmatpush.bf16.msra.mxu1 %v2715_v2  ;;  %v976_v29 = vand.u32 2147483647, %v3011_v27 }
  0xf4   :  { %v927_v3 = vsel %vm926_vm14, %v2265_v5, %v923_v37  ;;  %v970_v5 = vmul.f32 %v3026_v9, %v969_v48  ;;  %v979_v37 = vor.u32 1.1754944e-38, %v978_v19  ;;  %vm977_vm9 = vcmp.eq.f32.partialorder %v976_v29, 8.507059e+37 }
  0xf5   :  { %v932_v57 = vsel %vm929_vm15, %v931_v47, %v927_v3  ;;  %v1010_v47 = vpop.permute.xlu0 %1009  ;;  %v1107_v29 = vrot.slane %v2964_v15, 4 }
  0xf6   :  { %v988_v6 = vmul.f32 %v986_v56, %v932_v57  ;;  %1205 = vmatpush.bf16.msra.mxu1 %v2747_v12  ;;  %v971_v24 = vadd.f32 %v3026_v9, %v970_v5  ;;  %vm1012_vm10 = vcmp.eq.s32.totalorder %v1010_v47, 1 }
  0xf7   :  { %vm2152_vm11 = vmpackc.low %vm1012_vm10, %vm1011_vm5 }
  0xf8   :  { %v2269_v7 = vpop.eup %2268  ;;  %v992_v63 = vadd.f32 %v990_v18, %v988_v6  ;;  %v975_v36 = vsel %vm974_vm7, %v3026_v9, %v971_v24  ;;  %v588_v9 = vperm.slane %v2977_v53, 2  ;;  %v1063_v53 = vunpack.c.l.bf16 %v2964_v15 }
  0xf9   :  { %v995_v4 = vsub.f32 0.0, %v2269_v7  ;;  %v980_v45 = vsel %vm977_vm9, %v979_v37, %v975_v36  ;;  %1841 = vperm.xlu1 %2249, %v1838_v50  }
  0xfa   :  { %2270 = vtanh.f32 %v992_v63  ;;  %1206 = vmatpush.bf16.msra.mxu1 %v2777_v21 }
  0xfb   :  { %v997_v23 = vmul.f32 %v995_v4, %v965_v16  ;;  %v1106_v4 = vrot.slane %v2960_v54, 4 }
  0xfd   :  { %v999_v39 = vadd.f32 %v2269_v7, %v997_v23  ;;  %v1062_v7 = vunpack.c.l.bf16 %v2960_v54  ;;  %v1110_v26 = vunpack.c.l.bf16 %v1106_v4 }
  0xfe   :  { %1207 = vmatpush.bf16.msra.mxu1 %v2817_v34 }
  0xff   :  { %v3055_v35 = vsel %vm1011_vm5, %v999_v39, 0.0 }
 0x100   :  { %v2271_v22 = vpop.eup %2270 }
 0x101   :  { %v996_v48 = vsub.f32 0.0, %v2271_v22 }
 0x102   :  { %1208 = vmatpush.bf16.msra.mxu1 %v2845_v44 }
 0x103   :  { %v998_v27 = vmul.f32 %v996_v48, %v980_v45  ;;  %v1111_v48 = vunpack.c.l.bf16 %v1107_v29 }
 0x105   :  { %v1000_v62 = vadd.f32 %v2271_v22, %v998_v27 }
 0x107   :  { %v3061_v3 = vsel %vm1012_vm10, %v1000_v62, 0.0  ;;  %v2153_v56 = vpack.c.bf16 %v1000_v62, %v999_v39 }
 0x109   :  { %2154 = vmatmul.msk.bf16.vlgmr.msrb.gmra.mxu1 %vm2152_vm11, %v2153_v56  ;;  %2157 = vmatmul.msk.bf16.vlgmr.msrb.gmra.mxu2 %vm2152_vm11, %v2153_v56 }
 0x10a   :  { %2160 = vmatmul.msk.bf16.vlgmr.msrb.gmra.mxu3 %vm2152_vm11, %v2153_v56  ;;  %1382 = vmatpush.bf16.msrb.mxu1 %v2761_v17 }
 0x10b   :  { %1521 = vmatpush.bf16.msrb.mxu2 %v2646_v42  ;;  %1535 = vmatpush.bf16.msrb.mxu3 %v2648_v43 }
 0x10e   :  { %1383 = vmatpush.bf16.msrb.mxu1 %v2797_v28 }
 0x10f   :  { %1522 = vmatpush.bf16.msrb.mxu2 %v2673_v51  ;;  %1536 = vmatpush.bf16.msrb.mxu3 %v2675_v52 }
 0x112   :  { %1384 = vmatpush.bf16.msrb.mxu1 %v2832_v38 }
 0x113   :  { %1523 = vmatpush.bf16.msrb.mxu2 %v2695_v59  ;;  %1537 = vmatpush.bf16.msrb.mxu3 %v2697_v60 }
 0x116   :  { %1385 = vmatpush.bf16.msrb.mxu1 %v2849_v46 }
 0x117   :  { %1524 = vmatpush.bf16.msrb.mxu2 %v2713_v1  ;;  %1538 = vmatpush.bf16.msrb.mxu3 %v2715_v2 }
 0x11a   :  { %1386 = vmatpush.bf16.msrb.mxu1 %v2860_v49 }
 0x11b   :  { %1525 = vmatpush.bf16.msrb.mxu2 %v2745_v11  ;;  %1539 = vmatpush.bf16.msrb.mxu3 %v2747_v12 }
 0x11e   :  { %1387 = vmatpush.bf16.msrb.mxu1 %v2877_v55 }
 0x11f   :  { %1526 = vmatpush.bf16.msrb.mxu2 %v2775_v20  ;;  %1540 = vmatpush.bf16.msrb.mxu3 %v2777_v21 }
 0x122   :  { %1388 = vmatpush.bf16.msrb.mxu1 %v2888_v61 }
 0x123   :  { %1527 = vmatpush.bf16.msrb.mxu2 %v2815_v33  ;;  %1541 = vmatpush.bf16.msrb.mxu3 %v2817_v34 }
 0x126   :  { %1389 = vmatpush.bf16.msrb.mxu1 %v2899_v0 }
 0x127   :  { %1528 = vmatpush.bf16.msrb.mxu2 %v2843_v41  ;;  %1542 = vmatpush.bf16.msrb.mxu3 %v2845_v44 }
 0x142   :  { %v669_v30 = vpop.f32.mrf.mxu1 }
 0x143   :  { %v670_v57 = vadd.f32 %v669_v30, %v588_v9 }
 0x145   :  { %v675_v6 = vpack.c.bf16 %v670_v57, %v670_v57 }
 0x147   :  { %680 = vst [vmem:[#allocation2 + $0x80] sm:$0xf] %v675_v6 }
 0x14a   :  { %v671_v18 = vpop.f32.mrf.mxu1 }
 0x14b   :  { %v672_v10 = vadd.f32 %v671_v18, %v588_v9 }
 0x14d   :  { %v677_v5 = vpack.c.bf16 %v672_v10, %v672_v10 }
 0x14f   :  { %682 = vst [vmem:[#allocation2 + $0x8c] sm:$0xf] %v677_v5 }
 0x186   :  { %v1029_v8 = vpop.f32.mrf.mxu1 }
 0x187   :  { %v1064_v63 = vadd.f32 %v1062_v7, %v1029_v8 }
 0x189   :  { %v2161_v13 = vmul.f32 -1.442695, %v1064_v63 }
 0x18b   :  { %2272 = vpow2.f32 %v2161_v13 }
 0x18c   :  { %v1043_v16 = vpop.f32.mrf.mxu2 }
 0x18d   :  { %v1112_v23 = vadd.f32 %v1110_v26, %v1043_v16  ;;  %v1057_v15 = vpop.f32.mrf.mxu3  ;;  %v1016_v26 = vld [vmem:[#allocation2 + $0x20] sm:$0xf] }
 0x18e   :  { %v1031_v24 = vpop.f32.mrf.mxu1 }
 0x18f   :  { %v2163_v19 = vmul.f32 -1.442695, %v1112_v23  ;;  %v1065_v39 = vadd.f32 %v1063_v53, %v1031_v24  ;;  %v1152_v23 = vadd.f32 %v3016_v40, %v1057_v15 }
 0x191   :  { %v2273_v36 = vpop.eup %2272  ;;  %2274 = vpow2.f32 %v2163_v19  ;;  %v2162_v22 = vmul.f32 -1.442695, %v1065_v39 }
 0x192   :  { %v1072_v37 = vadd.f32 1.0, %v2273_v36  ;;  %v1156_v36 = vunpack.c.l.bf16 %v1016_v26 }
 0x193   :  { %2276 = vpow2.f32 %v2162_v22 }
 0x194   :  { %2278 = vrcp.f32 %v1072_v37  ;;  %v1045_v54 = vpop.f32.mrf.mxu2  ;;  %v1085_v6 = vand.u32 2147483648, %v1072_v37  ;;  %v1083_v5 = vand.u32 2147483647, %v1072_v37  ;;  %vm1079_vm13 = vweird.f32 %v1072_v37 }
 0x195   :  { %v1113_v50 = vadd.f32 %v1111_v48, %v1045_v54  ;;  %v1059_v22 = vpop.f32.mrf.mxu3 }
 0x196   :  { %v1086_v16 = vor.u32 1.1754944e-38, %v1085_v6  ;;  %vm1084_vm15 = vcmp.eq.f32.partialorder %v1083_v5, 8.507059e+37  ;;  %v1153_v15 = vadd.f32 %v3016_v40, %v1059_v22 }
 0x197   :  { %v2275_v45 = vpop.eup %2274  ;;  %v2164_v27 = vmul.f32 -1.442695, %v1113_v50 }
 0x198   :  { %v3093_v47 = vadd.f32 1.0, %v2275_v45 }
 0x199   :  { %v2277_v62 = vpop.eup %2276  ;;  %2280 = vpow2.f32 %v2164_v27 }
 0x19a   :  { %v2279_v56 = vpop.eup %2278  ;;  %2282 = vrcp.f32 %v3093_v47  ;;  %v1073_v9 = vadd.f32 1.0, %v2277_v62  ;;  %vm1127_vm7 = vweird.f32 %v3093_v47  ;;  %v1131_v26 = vand.u32 2147483647, %v3093_v47 }
 0x19b   :  { %v1075_v30 = vmul.f32 %v2279_v56, %v1072_v37  ;;  %vm1080_vm12 = vweird.f32 %v2279_v56  ;;  %v1337_v37 = vsel %vm1335_vm0, 1, %v2375_v58 }
 0x19c   :  { %2284 = vrcp.f32 %v1073_v9  ;;  %vm1081_vm14 = vmor %vm1079_vm13, %vm1080_vm12  ;;  %v1100_v50 = vand.u32 2147483648, %v1073_v9  ;;  %1340 = vperm.xlu2 %2250, %v1337_v37   ;;  %v1098_v62 = vand.u32 2147483647, %v1073_v9  ;;  %vm1094_vm3 = vweird.f32 %v1073_v9 }
 0x19d   :  { %v1076_v57 = vsub.f32 1.0, %v1075_v30  ;;  %vm1132_vm9 = vcmp.eq.f32.partialorder %v1131_v26, 8.507059e+37 }
 0x19e   :  { %v1101_v6 = vor.u32 1.1754944e-38, %v1100_v50  ;;  %vm1099_vm6 = vcmp.eq.f32.partialorder %v1098_v62, 8.507059e+37 }
 0x19f   :  { %v2281_v18 = vpop.eup %2280  ;;  %v1077_v10 = vmul.f32 %v2279_v56, %v1076_v57  ;;  %v1018_v57 = vld [vmem:[#allocation2 + $0x2c] sm:$0xf] }
 0x1a0   :  { %v3096_v7 = vpop.eup %2282  ;;  %v3098_v8 = vadd.f32 1.0, %v2281_v18 }
 0x1a1   :  { %v1123_v63 = vmul.f32 %v3096_v7, %v3093_v47  ;;  %v1078_v4 = vadd.f32 %v2279_v56, %v1077_v10  ;;  %vm1128_vm5 = vweird.f32 %v3096_v7  ;;  %v1133_v10 = vand.u32 2147483648, %v3093_v47 }
 0x1a2   :  { %v2285_v13 = vpop.eup %2284  ;;  %2286 = vrcp.f32 %v3098_v8  ;;  %vm1129_vm8 = vmor %vm1127_vm7, %vm1128_vm5  ;;  %vm1142_vm13 = vweird.f32 %v3098_v8  ;;  %v1146_v50 = vand.u32 2147483647, %v3098_v8 }
 0x1a3   :  { %v1124_v53 = vsub.f32 1.0, %v1123_v63  ;;  %v1082_v24 = vsel %vm1081_vm14, %v2279_v56, %v1078_v4  ;;  %v1090_v19 = vmul.f32 %v2285_v13, %v1073_v9  ;;  %vm1095_vm1 = vweird.f32 %v2285_v13 }
 0x1a4   :  { %v1087_v39 = vsel %vm1084_vm15, %v1086_v16, %v1082_v24  ;;  %vm1096_vm4 = vmor %vm1094_vm3, %vm1095_vm1  ;;  %v1338_v4 = vsel %vm1336_vm2, 1, %v2375_v58  ;;  %v1157_v16 = vunpack.c.l.bf16 %v1018_v57  ;;  %vm1147_vm15 = vcmp.eq.f32.partialorder %v1146_v50, 8.507059e+37 }
 0x1a5   :  { %v1154_v29 = vmul.f32 %v1152_v23, %v1087_v39  ;;  %v1091_v48 = vsub.f32 1.0, %v1090_v19  ;;  %v1125_v54 = vmul.f32 %v3096_v7, %v1124_v53  ;;  %1343 = vperm.xlu2 %2250, %v1338_v4   ;;  %v1134_v39 = vor.u32 1.1754944e-38, %v1133_v10 }
 0x1a7   :  { %v1158_v45 = vadd.f32 %v1156_v36, %v1154_v29  ;;  %v1092_v27 = vmul.f32 %v2285_v13, %v1091_v48  ;;  %v1126_v18 = vadd.f32 %v3096_v7, %v1125_v54  ;;  %v2372_v29 = vld [vmem:[%s3307_s1] sm:$0xff]  ;;  %v1174_v36 = vpop.permute.xlu1 %1173 }
 0x1a8   :  { %v2287_v56 = vpop.eup %2286  ;;  %vm1669_vm10 = vcmp.gt.s32.totalorder %v2372_v29, 4  ;;  %vm1178_vm12 = vcmp.eq.s32.totalorder %v1174_v36, 1 }
 0x1a9   :  { %2288 = vtanh.f32 %v1158_v45  ;;  %v1138_v25 = vmul.f32 %v2287_v56, %v3098_v8  ;;  %v1093_v30 = vadd.f32 %v2285_v13, %v1092_v27  ;;  %v1130_v53 = vsel %vm1129_vm8, %v3096_v7, %v1126_v18 }
 0x1aa   :  { %v1135_v47 = vsel %vm1132_vm9, %v1134_v39, %v1130_v53  ;;  %vm1143_vm11 = vweird.f32 %v2287_v56  ;;  %v1148_v7 = vand.u32 2147483648, %v3098_v8  ;;  %v1671_v37 = vsel %vm1669_vm10, 1, %v2375_v58 }
 0x1ab   :  { %v1139_v5 = vsub.f32 1.0, %v1138_v25  ;;  %v1097_v63 = vsel %vm1096_vm4, %v2285_v13, %v1093_v30  ;;  %vm1144_vm14 = vmor %vm1142_vm13, %vm1143_vm11  ;;  %v2373_v30 = vld [vmem:[%s3307_s1 + $0x8] sm:$0xff] }
 0x1ac   :  { %v1102_v32 = vsel %vm1099_vm6, %v1101_v6, %v1097_v63  ;;  %vm1837_vm0 = vcmp.gt.s32.totalorder %v2373_v30, 5 }
 0x1ad   :  { %v1155_v9 = vmul.f32 %v1153_v15, %v1102_v32  ;;  %v1140_v23 = vmul.f32 %v2287_v56, %v1139_v5  ;;  %1674 = vperm.xlu2 %2250, %v1671_v37   ;;  %v1149_v15 = vor.u32 1.1754944e-38, %v1148_v7  ;;  %v1839_v8 = vsel %vm1837_vm0, 1, %v2375_v58 }
 0x1af   :  { %v2289_v24 = vpop.eup %2288  ;;  %v1159_v19 = vadd.f32 %v1157_v16, %v1155_v9  ;;  %v1141_v48 = vadd.f32 %v2287_v56, %v1140_v23  ;;  %v1177_v18 = vpop.permute.xlu1 %1176 }
 0x1b0   :  { %v1162_v13 = vsub.f32 %v3055_v35, %v2289_v24  ;;  %vm1179_vm1 = vcmp.eq.s32.totalorder %v1177_v18, 1 }
 0x1b1   :  { %2290 = vtanh.f32 %v1159_v19  ;;  %v1145_v27 = vsel %vm1144_vm14, %v2287_v56, %v1141_v48  ;;  %v1183_v48 = vld [vmem:[#allocation2 + $0x38] sm:$0xf] }
 0x1b2   :  { %v1164_v22 = vmul.f32 %v1162_v13, %v1135_v47  ;;  %v1150_v57 = vsel %vm1147_vm15, %v1149_v15, %v1145_v27 }
 0x1b4   :  { %v1166_v54 = vadd.f32 %v2289_v24, %v1164_v22 }
 0x1b5   :  { %1844 = vperm.xlu2 %2250, %v1839_v8  }
 0x1b6   :  { %v3126_v45 = vsel %vm1178_vm12, %v1166_v54, %v3055_v35 }
 0x1b7   :  { %v2291_v62 = vpop.eup %2290 }
 0x1b8   :  { %v1163_v25 = vsub.f32 %v3061_v3, %v2291_v62 }
 0x1ba   :  { %v1165_v6 = vmul.f32 %v1163_v25, %v1150_v57  ;;  %v1323_v25 = vunpack.c.l.bf16 %v1183_v48 }
 0x1bc   :  { %v1167_v10 = vadd.f32 %v2291_v62, %v1165_v6 }
 0x1be   :  { %v3134_v35 = vsel %vm1179_vm1, %v1167_v10, %v3061_v3 }
 0x1bf   :  { %v1186_v56 = vpack.c.bf16 %v3134_v35, %v3126_v45 }
 0x1c1   :  { %1195 = vmatmul.bf16.vlgmr.msra.gmra.mxu0 %v1186_v56  ;;  %1209 = vmatmul.bf16.vlgmr.msra.gmra.mxu1 %v1186_v56 }
 0x1c2   :  { %1223 = vmatmul.bf16.vlgmr.msra.gmra.mxu2 %v1186_v56  ;;  %1549 = vmatpush.bf16.msra.mxu0 %v2761_v17 }
 0x1c3   :  { %1688 = vmatpush.bf16.msra.mxu1 %v2646_v42  ;;  %1702 = vmatpush.bf16.msra.mxu2 %v2648_v43  ;;  %v1273_v42 = vrot.slane %v2962_v14, 4  ;;  %v1229_v43 = vunpack.c.l.bf16 %v2962_v14 }
 0x1c6   :  { %1550 = vmatpush.bf16.msra.mxu0 %v2797_v28 }
 0x1c7   :  { %1689 = vmatpush.bf16.msra.mxu1 %v2673_v51  ;;  %1703 = vmatpush.bf16.msra.mxu2 %v2675_v52  ;;  %v1277_v51 = vunpack.c.l.bf16 %v1273_v42 }
 0x1ca   :  { %1551 = vmatpush.bf16.msra.mxu0 %v2832_v38 }
 0x1cb   :  { %1690 = vmatpush.bf16.msra.mxu1 %v2695_v59  ;;  %1704 = vmatpush.bf16.msra.mxu2 %v2697_v60 }
 0x1ce   :  { %1552 = vmatpush.bf16.msra.mxu0 %v2849_v46 }
 0x1cf   :  { %1691 = vmatpush.bf16.msra.mxu1 %v2713_v1  ;;  %1705 = vmatpush.bf16.msra.mxu2 %v2715_v2 }
 0x1d2   :  { %1553 = vmatpush.bf16.msra.mxu0 %v2860_v49 }
 0x1d3   :  { %1692 = vmatpush.bf16.msra.mxu1 %v2745_v11  ;;  %1706 = vmatpush.bf16.msra.mxu2 %v2747_v12  ;;  %v1274_v11 = vrot.slane %v2969_v31, 4  ;;  %v1230_v12 = vunpack.c.l.bf16 %v2969_v31 }
 0x1d6   :  { %1554 = vmatpush.bf16.msra.mxu0 %v2877_v55 }
 0x1d7   :  { %1693 = vmatpush.bf16.msra.mxu1 %v2775_v20  ;;  %1707 = vmatpush.bf16.msra.mxu2 %v2777_v21  ;;  %v1278_v20 = vunpack.c.l.bf16 %v1274_v11 }
 0x1da   :  { %1555 = vmatpush.bf16.msra.mxu0 %v2888_v61 }
 0x1db   :  { %1694 = vmatpush.bf16.msra.mxu1 %v2815_v33  ;;  %1708 = vmatpush.bf16.msra.mxu2 %v2817_v34 }
 0x1de   :  { %1556 = vmatpush.bf16.msra.mxu0 %v2899_v0 }
 0x1df   :  { %1695 = vmatpush.bf16.msra.mxu1 %v2843_v41  ;;  %1709 = vmatpush.bf16.msra.mxu2 %v2845_v44 }
 0x23e   :  { %v1196_v52 = vpop.f32.mrf.mxu0  ;;  %v1210_v58 = vpop.f32.mrf.mxu1 }
 0x23f   :  { %v1231_v59 = vadd.f32 %v1229_v43, %v1196_v52  ;;  %v1279_v60 = vadd.f32 %v1277_v51, %v1210_v58  ;;  %v1185_v58 = vld [vmem:[#allocation2 + $0x44] sm:$0xf] }
 0x241   :  { %v2165_v1 = vmul.f32 -1.442695, %v1231_v59  ;;  %v2167_v2 = vmul.f32 -1.442695, %v1279_v60 }
 0x243   :  { %2292 = vpow2.f32 %v2165_v1 }
 0x244   :  { %2294 = vpow2.f32 %v2167_v2 }
 0x245   :  { %v1224_v24 = vpop.f32.mrf.mxu2 }
 0x246   :  { %v1198_v21 = vpop.f32.mrf.mxu0  ;;  %v1212_v33 = vpop.f32.mrf.mxu1  ;;  %v1319_v54 = vadd.f32 %v3016_v40, %v1224_v24 }
 0x247   :  { %v1232_v34 = vadd.f32 %v1230_v12, %v1198_v21  ;;  %v1280_v41 = vadd.f32 %v1278_v20, %v1212_v33  ;;  %v1324_v12 = vunpack.c.l.bf16 %v1185_v58 }
 0x249   :  { %v2293_v44 = vpop.eup %2292  ;;  %v2166_v14 = vmul.f32 -1.442695, %v1232_v34  ;;  %v2168_v63 = vmul.f32 -1.442695, %v1280_v41 }
 0x24a   :  { %v2295_v3 = vpop.eup %2294  ;;  %v1239_v5 = vadd.f32 1.0, %v2293_v44 }
 0x24b   :  { %2296 = vpow2.f32 %v2166_v14  ;;  %v3166_v4 = vadd.f32 1.0, %v2295_v3  ;;  %v1341_v14 = vpop.permute.xlu2 %1340 }
 0x24c   :  { %2298 = vrcp.f32 %v1239_v5  ;;  %v1252_v19 = vand.u32 2147483648, %v1239_v5  ;;  %v1250_v29 = vand.u32 2147483647, %v1239_v5  ;;  %vm1246_vm3 = vweird.f32 %v1239_v5 }
 0x24d   :  { %2300 = vpow2.f32 %v2168_v63  ;;  %v1226_v42 = vpop.f32.mrf.mxu2  ;;  %v1300_v41 = vand.u32 2147483648, %v3166_v4  ;;  %vm1294_vm11 = vweird.f32 %v3166_v4  ;;  %v1298_v44 = vand.u32 2147483647, %v3166_v4 }
 0x24e   :  { %2302 = vrcp.f32 %v3166_v4  ;;  %v1253_v7 = vor.u32 1.1754944e-38, %v1252_v19  ;;  %vm1251_vm5 = vcmp.eq.f32.partialorder %v1250_v29, 8.507059e+37  ;;  %v1320_v1 = vadd.f32 %v3016_v40, %v1226_v42 }
 0x24f   :  { %vm1299_vm14 = vcmp.eq.f32.partialorder %v1298_v44, 8.507059e+37 }
 0x251   :  { %v2297_v32 = vpop.eup %2296 }
 0x252   :  { %v2299_v26 = vpop.eup %2298  ;;  %v1240_v31 = vadd.f32 1.0, %v2297_v32  ;;  %v1301_v32 = vor.u32 1.1754944e-38, %v1300_v41 }
 0x253   :  { %v1242_v9 = vmul.f32 %v2299_v26, %v1239_v5  ;;  %v2301_v16 = vpop.eup %2300  ;;  %vm1247_vm2 = vweird.f32 %v2299_v26 }
 0x254   :  { %2304 = vrcp.f32 %v1240_v31  ;;  %v3169_v53 = vadd.f32 1.0, %v2301_v16  ;;  %v3171_v39 = vpop.eup %2302  ;;  %vm1248_vm4 = vmor %vm1246_vm3, %vm1247_vm2  ;;  %v1267_v8 = vand.u32 2147483648, %v1240_v31  ;;  %v1265_v56 = vand.u32 2147483647, %v1240_v31 }
 0x255   :  { %v1243_v23 = vsub.f32 1.0, %v1242_v9  ;;  %v1290_v22 = vmul.f32 %v3171_v39, %v3166_v4  ;;  %vm1261_vm7 = vweird.f32 %v1240_v31  ;;  %vm1295_vm10 = vweird.f32 %v3171_v39 }
 0x256   :  { %2306 = vrcp.f32 %v3169_v53  ;;  %v1268_v59 = vor.u32 1.1754944e-38, %v1267_v8  ;;  %vm1266_vm9 = vcmp.eq.f32.partialorder %v1265_v56, 8.507059e+37  ;;  %vm1296_vm12 = vmor %vm1294_vm11, %vm1295_vm10  ;;  %vm1309_vm15 = vweird.f32 %v3169_v53 }
 0x257   :  { %v1244_v13 = vmul.f32 %v2299_v26, %v1243_v23  ;;  %v1291_v57 = vsub.f32 1.0, %v1290_v22  ;;  %vm1345_vm2 = vcmp.eq.s32.totalorder %v1341_v14, 1 }
 0x259   :  { %v1245_v47 = vadd.f32 %v2299_v26, %v1244_v13  ;;  %v1292_v51 = vmul.f32 %v3171_v39, %v1291_v57 }
 0x25a   :  { %v2305_v36 = vpop.eup %2304 }
 0x25b   :  { %v1249_v37 = vsel %vm1248_vm4, %v2299_v26, %v1245_v47  ;;  %v1257_v50 = vmul.f32 %v2305_v36, %v1240_v31  ;;  %vm1262_vm6 = vweird.f32 %v2305_v36  ;;  %v1293_v21 = vadd.f32 %v3171_v39, %v1292_v51  ;;  %v1344_v47 = vpop.permute.xlu2 %1343 }
 0x25c   :  { %v1254_v27 = vsel %vm1251_vm5, %v1253_v7, %v1249_v37  ;;  %v2307_v62 = vpop.eup %2306  ;;  %vm1263_vm8 = vmor %vm1261_vm7, %vm1262_vm6  ;;  %v1315_v26 = vand.u32 2147483648, %v3169_v53  ;;  %v1313_v31 = vand.u32 2147483647, %v3169_v53  ;;  %vm1346_vm3 = vcmp.eq.s32.totalorder %v1344_v47, 1  ;;  %v1351_v37 = vld [vmem:[#allocation2 + $0x54] sm:$0xff] }
 0x25d   :  { %v1321_v15 = vmul.f32 %v1319_v54, %v1254_v27  ;;  %v1258_v30 = vsub.f32 1.0, %v1257_v50  ;;  %v1305_v6 = vmul.f32 %v2307_v62, %v3169_v53  ;;  %v1297_v3 = vsel %vm1296_vm12, %v3171_v39, %v1293_v21 }
 0x25e   :  { %vm1310_vm13 = vweird.f32 %v2307_v62  ;;  %v1302_v9 = vsel %vm1299_vm14, %v1301_v32, %v1297_v3  ;;  %v1316_v24 = vor.u32 1.1754944e-38, %v1315_v26  ;;  %vm1314_vm1 = vcmp.eq.f32.partialorder %v1313_v31, 8.507059e+37 }
 0x25f   :  { %v1325_v18 = vadd.f32 %v1323_v25, %v1321_v15  ;;  %v1259_v10 = vmul.f32 %v2305_v36, %v1258_v30  ;;  %v1306_v52 = vsub.f32 1.0, %v1305_v6  ;;  %vm1311_vm0 = vmor %vm1309_vm15, %vm1310_vm13 }
 0x261   :  { %2308 = vtanh.f32 %v1325_v18  ;;  %v1260_v43 = vadd.f32 %v2305_v36, %v1259_v10  ;;  %v1307_v20 = vmul.f32 %v2307_v62, %v1306_v52 }
 0x263   :  { %v1264_v60 = vsel %vm1263_vm8, %v2305_v36, %v1260_v43  ;;  %v1308_v63 = vadd.f32 %v2307_v62, %v1307_v20 }
 0x264   :  { %v1269_v2 = vsel %vm1266_vm9, %v1268_v59, %v1264_v60 }
 0x265   :  { %v1322_v11 = vmul.f32 %v1320_v1, %v1269_v2  ;;  %v1312_v16 = vsel %vm1311_vm0, %v2307_v62, %v1308_v63 }
 0x266   :  { %v1317_v39 = vsel %vm1314_vm1, %v1316_v24, %v1312_v16 }
 0x267   :  { %v2309_v33 = vpop.eup %2308  ;;  %v1326_v34 = vadd.f32 %v1324_v12, %v1322_v11 }
 0x268   :  { %v1329_v5 = vsub.f32 %v3126_v45, %v2309_v33 }
 0x269   :  { %2310 = vtanh.f32 %v1326_v34  ;;  %v1350_v34 = vld [vmem:[#allocation2 + $0x50] sm:$0xf] }
 0x26a   :  { %v1331_v4 = vmul.f32 %v1329_v5, %v1302_v9  ;;  %v1490_v26 = vunpack.c.l.bf16 %v1350_v34 }
 0x26c   :  { %v1333_v13 = vadd.f32 %v2309_v33, %v1331_v4 }
 0x26e   :  { %v3192_v22 = vsel %vm1345_vm2, %v1333_v13, %v3126_v45  ;;  %v1349_v45 = vld [vmem:[#allocation2 + $0x48] sm:$0xff] }
 0x26f   :  { %v2311_v23 = vpop.eup %2310 }
 0x270   :  { %v1330_v19 = vsub.f32 %v3134_v35, %v2311_v23 }
 0x272   :  { %v1332_v29 = vmul.f32 %v1330_v19, %v1317_v39 }
 0x274   :  { %v1334_v36 = vadd.f32 %v2311_v23, %v1332_v29 }
 0x276   :  { %v3195_v53 = vsel %vm1346_vm3, %v1334_v36, %v3134_v35  ;;  %v1440_v35 = vrot.slane %v1349_v45, 4  ;;  %v1352_v36 = vld [vmem:[#allocation2 + $0x5c] sm:$0xf] }
 0x277   :  { %v1353_v48 = vpack.c.bf16 %v3195_v53, %v3192_v22 }
 0x278   :  { %v1444_v54 = vunpack.c.l.bf16 %v1440_v35 }
 0x279   :  { %1362 = vmatmul.bf16.vlgmr.msra.gmra.mxu3 %v1353_v48  ;;  %1376 = vmatmul.bf16.vlgmr.msrb.gmra.mxu0 %v1353_v48 }
 0x27a   :  { %1390 = vmatmul.bf16.vlgmr.msrb.gmra.mxu1 %v1353_v48  ;;  %1716 = vmatpush.bf16.msra.mxu3 %v2761_v17  ;;  %v1441_v17 = vrot.slane %v1351_v37, 4 }
 0x27c   :  { %v1445_v62 = vunpack.c.l.bf16 %v1441_v17 }
 0x27e   :  { %1717 = vmatpush.bf16.msra.mxu3 %v2797_v28  ;;  %v1396_v28 = vunpack.c.l.bf16 %v1349_v45 }
 0x282   :  { %1718 = vmatpush.bf16.msra.mxu3 %v2832_v38 }
 0x286   :  { %1719 = vmatpush.bf16.msra.mxu3 %v2849_v46 }
 0x28a   :  { %1720 = vmatpush.bf16.msra.mxu3 %v2860_v49 }
 0x28e   :  { %1721 = vmatpush.bf16.msra.mxu3 %v2877_v55 }
 0x292   :  { %1722 = vmatpush.bf16.msra.mxu3 %v2888_v61  ;;  %v1397_v61 = vunpack.c.l.bf16 %v1351_v37 }
 0x296   :  { %1723 = vmatpush.bf16.msra.mxu3 %v2899_v0 }
 0x2f6   :  { %v1377_v7 = vpop.f32.mrf.mxu0 }
 0x2f7   :  { %v1446_v50 = vadd.f32 %v1444_v54, %v1377_v7  ;;  %v1391_v60 = vpop.f32.mrf.mxu1  ;;  %v1491_v54 = vunpack.c.l.bf16 %v1352_v36 }
 0x2f8   :  { %v1486_v14 = vadd.f32 %v3016_v40, %v1391_v60  ;;  %v1516_v60 = vld [vmem:[#allocation2 + $0x60] sm:$0xff] }
 0x2f9   :  { %v2171_v46 = vmul.f32 -1.442695, %v1446_v50 }
 0x2fc   :  { %v1363_v27 = vpop.f32.mrf.mxu3 }
 0x2fd   :  { %v1398_v38 = vadd.f32 %v1396_v28, %v1363_v27 }
 0x2fe   :  { %v1379_v15 = vpop.f32.mrf.mxu0 }
 0x2ff   :  { %v2169_v49 = vmul.f32 -1.442695, %v1398_v38  ;;  %v1447_v25 = vadd.f32 %v1445_v62, %v1379_v15  ;;  %v1393_v39 = vpop.f32.mrf.mxu1 }
 0x300   :  { %v1487_v45 = vadd.f32 %v3016_v40, %v1393_v39 }
 0x301   :  { %2312 = vpow2.f32 %v2169_v49  ;;  %v2172_v55 = vmul.f32 -1.442695, %v1447_v25 }
 0x302   :  { %2314 = vpow2.f32 %v2171_v46 }
 0x303   :  { %2316 = vpow2.f32 %v2172_v55 }
 0x304   :  { %v1365_v0 = vpop.f32.mrf.mxu3 }
 0x305   :  { %v1399_v30 = vadd.f32 %v1397_v61, %v1365_v0 }
 0x307   :  { %v2313_v57 = vpop.eup %2312  ;;  %v2170_v6 = vmul.f32 -1.442695, %v1399_v30 }
 0x308   :  { %v2315_v8 = vpop.eup %2314  ;;  %v1406_v18 = vadd.f32 1.0, %v2313_v57 }
 0x309   :  { %2318 = vpow2.f32 %v2170_v6  ;;  %v3207_v10 = vadd.f32 1.0, %v2315_v8  ;;  %v2317_v56 = vpop.eup %2316 }
 0x30a   :  { %2320 = vrcp.f32 %v1406_v18  ;;  %v3210_v43 = vadd.f32 1.0, %v2317_v56  ;;  %v1419_v1 = vand.u32 2147483648, %v1406_v18  ;;  %v1417_v12 = vand.u32 2147483647, %v1406_v18 }
 0x30b   :  { %2322 = vrcp.f32 %v3207_v10  ;;  %vm1413_vm5 = vweird.f32 %v1406_v18  ;;  %v1467_v27 = vand.u32 2147483648, %v3207_v10  ;;  %vm1461_vm13 = vweird.f32 %v3207_v10 }
 0x30c   :  { %v1420_v41 = vor.u32 1.1754944e-38, %v1419_v1  ;;  %vm1418_vm7 = vcmp.eq.f32.partialorder %v1417_v12, 8.507059e+37  ;;  %v1465_v62 = vand.u32 2147483647, %v3207_v10  ;;  %v1482_v25 = vand.u32 2147483648, %v3210_v43 }
 0x30d   :  { %v1468_v49 = vor.u32 1.1754944e-38, %v1467_v27  ;;  %vm1476_vm1 = vweird.f32 %v3210_v43  ;;  %v1480_v55 = vand.u32 2147483647, %v3210_v43  ;;  %v1607_v1 = vrot.slane %v1516_v60, 4 }
 0x30e   :  { %vm1466_vm0 = vcmp.eq.f32.partialorder %v1465_v62, 8.507059e+37  ;;  %v1483_v6 = vor.u32 1.1754944e-38, %v1482_v25 }
 0x30f   :  { %v2319_v42 = vpop.eup %2318  ;;  %vm1481_vm3 = vcmp.eq.f32.partialorder %v1480_v55, 8.507059e+37 }
 0x310   :  { %v2321_v51 = vpop.eup %2320  ;;  %v1407_v52 = vadd.f32 1.0, %v2319_v42  ;;  %v1508_v42 = vpop.permute.xlu0 %1507 }
 0x311   :  { %v1409_v58 = vmul.f32 %v2321_v51, %v1406_v18  ;;  %v3213_v2 = vpop.eup %2322  ;;  %vm1414_vm4 = vweird.f32 %v2321_v51 }
 0x312   :  { %2324 = vrcp.f32 %v1407_v52  ;;  %v1457_v33 = vmul.f32 %v3213_v2, %v3207_v10  ;;  %vm1415_vm6 = vmor %vm1413_vm5, %vm1414_vm4  ;;  %v1434_v16 = vand.u32 2147483648, %v1407_v52  ;;  %v1432_v19 = vand.u32 2147483647, %v1407_v52 }
 0x313   :  { %v1410_v59 = vsub.f32 1.0, %v1409_v58  ;;  %2326 = vrcp.f32 %v3210_v43  ;;  %vm1428_vm9 = vweird.f32 %v1407_v52  ;;  %vm1462_vm12 = vweird.f32 %v3213_v2 }
 0x314   :  { %v1458_v9 = vsub.f32 1.0, %v1457_v33  ;;  %v1435_v48 = vor.u32 1.1754944e-38, %v1434_v16  ;;  %vm1433_vm11 = vcmp.eq.f32.partialorder %v1432_v19, 8.507059e+37  ;;  %vm1463_vm14 = vmor %vm1461_vm13, %vm1462_vm12  ;;  %vm1512_vm4 = vcmp.eq.s32.totalorder %v1508_v42, 1 }
 0x315   :  { %v1411_v11 = vmul.f32 %v2321_v51, %v1410_v59 }
 0x316   :  { %v1459_v29 = vmul.f32 %v3213_v2, %v1458_v9 }
 0x317   :  { %v1412_v20 = vadd.f32 %v2321_v51, %v1411_v11  ;;  %v1611_v11 = vunpack.c.l.bf16 %v1607_v1 }
 0x318   :  { %v2325_v21 = vpop.eup %2324  ;;  %v1460_v17 = vadd.f32 %v3213_v2, %v1459_v29 }
 0x319   :  { %v2327_v44 = vpop.eup %2326  ;;  %v1416_v3 = vsel %vm1415_vm6, %v2321_v51, %v1412_v20  ;;  %v1424_v5 = vmul.f32 %v2325_v21, %v1407_v52  ;;  %vm1429_vm8 = vweird.f32 %v2325_v21  ;;  %v1511_v51 = vpop.permute.xlu1 %1510 }
 0x31a   :  { %v1421_v63 = vsel %vm1418_vm7, %v1420_v41, %v1416_v3  ;;  %v1472_v4 = vmul.f32 %v2327_v44, %v3210_v43  ;;  %vm1430_vm10 = vmor %vm1428_vm9, %vm1429_vm8  ;;  %v1464_v40 = vsel %vm1463_vm14, %v3213_v2, %v1460_v17  ;;  %vm1477_vm15 = vweird.f32 %v2327_v44 }
 0x31b   :  { %v1488_v32 = vmul.f32 %v1486_v14, %v1421_v63  ;;  %v1425_v31 = vsub.f32 1.0, %v1424_v5  ;;  %vm1478_vm2 = vmor %vm1476_vm1, %vm1477_vm15  ;;  %v1469_v61 = vsel %vm1466_vm0, %v1468_v49, %v1464_v40  ;;  %vm1513_vm5 = vcmp.eq.s32.totalorder %v1511_v51, 1  ;;  %v1519_v51 = vld [vmem:[#allocation2 + $0x74] sm:$0xf] }
 0x31c   :  { %v1473_v47 = vsub.f32 1.0, %v1472_v4  ;;  %v1563_v2 = vunpack.c.l.bf16 %v1516_v60 }
 0x31d   :  { %v1492_v23 = vadd.f32 %v1490_v26, %v1488_v32  ;;  %v1426_v24 = vmul.f32 %v2325_v21, %v1425_v31 }
 0x31e   :  { %v1474_v50 = vmul.f32 %v2327_v44, %v1473_v47 }
 0x31f   :  { %v1427_v13 = vadd.f32 %v2325_v21, %v1426_v24  ;;  %2328 = vtanh.f32 %v1492_v23 }
 0x320   :  { %v1475_v46 = vadd.f32 %v2327_v44, %v1474_v50  ;;  %v1517_v50 = vld [vmem:[#allocation2 + $0x68] sm:$0xf] }
 0x321   :  { %v1431_v35 = vsel %vm1430_vm10, %v2325_v21, %v1427_v13  ;;  %v1518_v21 = vld [vmem:[#allocation2 + $0x6c] sm:$0xff]  ;;  %v1657_v55 = vunpack.c.l.bf16 %v1517_v50  ;;  %v1685_v50 = vld [vmem:[#allocation2 + $0x84] sm:$0xff] }
 0x322   :  { %v1436_v7 = vsel %vm1433_vm11, %v1435_v48, %v1431_v35  ;;  %v1479_v0 = vsel %vm1478_vm2, %v2327_v44, %v1475_v46  ;;  %v1608_v44 = vrot.slane %v1518_v21, 4 }
 0x323   :  { %v1489_v37 = vmul.f32 %v1487_v45, %v1436_v7  ;;  %v1484_v18 = vsel %vm1481_vm3, %v1483_v6, %v1479_v0 }
 0x324   :  { %v1612_v14 = vunpack.c.l.bf16 %v1608_v44 }
 0x325   :  { %v2329_v28 = vpop.eup %2328  ;;  %v1493_v38 = vadd.f32 %v1491_v54, %v1489_v37 }
 0x326   :  { %v1496_v15 = vsub.f32 %v3192_v22, %v2329_v28 }
 0x327   :  { %2330 = vtanh.f32 %v1493_v38  ;;  %v3253_v38 = vld [vmem:[%s3308_s5] ss:$0 sm:$0xff] }
 0x328   :  { %v1498_v30 = vmul.f32 %v1496_v15, %v1469_v61 }
 0x32a   :  { %v1500_v56 = vadd.f32 %v2329_v28, %v1498_v30 }
 0x32c   :  { %v3233_v58 = vsel %vm1512_vm4, %v1500_v56, %v3192_v22 }
 0x32d   :  { %v2331_v57 = vpop.eup %2330 }
 0x32e   :  { %v1497_v8 = vsub.f32 %v3195_v53, %v2331_v57 }
 0x330   :  { %v1499_v10 = vmul.f32 %v1497_v8, %v1484_v18 }
 0x332   :  { %v1501_v52 = vadd.f32 %v2331_v57, %v1499_v10 }
 0x334   :  { %v3236_v43 = vsel %vm1513_vm5, %v1501_v52, %v3195_v53  ;;  %v1564_v53 = vunpack.c.l.bf16 %v1518_v21 }
 0x335   :  { %v1520_v59 = vpack.c.bf16 %v3236_v43, %v3233_v58 }
 0x337   :  { %1529 = vmatmul.bf16.vlgmr.msrb.gmra.mxu2 %v1520_v59  ;;  %1543 = vmatmul.bf16.vlgmr.msrb.gmra.mxu3 %v1520_v59 }
 0x338   :  { %1557 = vmatmul.bf16.vlgmr.msra.gmra.mxu0 %v1520_v59 }
 0x3b5   :  { %v1558_v48 = vpop.f32.mrf.mxu0 }
 0x3b6   :  { %v1653_v62 = vadd.f32 %v3253_v38, %v1558_v48 }
 0x3ba   :  { %v1530_v12 = vpop.f32.mrf.mxu2  ;;  %v1544_v20 = vpop.f32.mrf.mxu3 }
 0x3bb   :  { %v1565_v33 = vadd.f32 %v1563_v2, %v1530_v12  ;;  %v1613_v34 = vadd.f32 %v1611_v11, %v1544_v20  ;;  %v1658_v12 = vunpack.c.l.bf16 %v1519_v51 }
 0x3bd   :  { %v2173_v22 = vmul.f32 -1.442695, %v1565_v33  ;;  %v2175_v41 = vmul.f32 -1.442695, %v1613_v34  ;;  %v1560_v10 = vpop.f32.mrf.mxu0 }
 0x3be   :  { %v1654_v60 = vadd.f32 %v3253_v38, %v1560_v10 }
 0x3bf   :  { %2332 = vpow2.f32 %v2173_v22 }
 0x3c0   :  { %2334 = vpow2.f32 %v2175_v41 }
 0x3c2   :  { %v1532_v3 = vpop.f32.mrf.mxu2  ;;  %v1546_v5 = vpop.f32.mrf.mxu3 }
 0x3c3   :  { %v1566_v63 = vadd.f32 %v1564_v53, %v1532_v3  ;;  %v1614_v32 = vadd.f32 %v1612_v14, %v1546_v5 }
 0x3c5   :  { %v2333_v26 = vpop.eup %2332  ;;  %v2174_v31 = vmul.f32 -1.442695, %v1566_v63  ;;  %v2176_v16 = vmul.f32 -1.442695, %v1614_v32 }
 0x3c6   :  { %v2335_v9 = vpop.eup %2334  ;;  %v1573_v4 = vadd.f32 1.0, %v2333_v26 }
 0x3c7   :  { %2336 = vpow2.f32 %v2174_v31  ;;  %v3240_v23 = vadd.f32 1.0, %v2335_v9 }
 0x3c8   :  { %2338 = vrcp.f32 %v1573_v4  ;;  %v1586_v45 = vand.u32 2147483648, %v1573_v4  ;;  %v1584_v37 = vand.u32 2147483647, %v1573_v4  ;;  %vm1580_vm7 = vweird.f32 %v1573_v4 }
 0x3c9   :  { %2340 = vpow2.f32 %v2176_v16  ;;  %v1634_v34 = vand.u32 2147483648, %v3240_v23  ;;  %vm1628_vm15 = vweird.f32 %v3240_v23  ;;  %v1632_v41 = vand.u32 2147483647, %v3240_v23 }
 0x3ca   :  { %2342 = vrcp.f32 %v3240_v23  ;;  %v1587_v28 = vor.u32 1.1754944e-38, %v1586_v45  ;;  %vm1585_vm9 = vcmp.eq.f32.partialorder %v1584_v37, 8.507059e+37  ;;  %v1683_v45 = vld [vmem:[#allocation2 + $0x78] sm:$0xff] }
 0x3cb   :  { %v1635_v3 = vor.u32 1.1754944e-38, %v1634_v34  ;;  %vm1633_vm2 = vcmp.eq.f32.partialorder %v1632_v41, 8.507059e+37 }
 0x3cd   :  { %v2337_v24 = vpop.eup %2336 }
 0x3ce   :  { %v2339_v19 = vpop.eup %2338  ;;  %v1574_v39 = vadd.f32 1.0, %v2337_v24  ;;  %v1678_v24 = vpop.permute.xlu0 %1677 }
 0x3cf   :  { %v1576_v13 = vmul.f32 %v2339_v19, %v1573_v4  ;;  %v2341_v29 = vpop.eup %2340  ;;  %vm1581_vm6 = vweird.f32 %v2339_v19 }
 0x3d0   :  { %2344 = vrcp.f32 %v1574_v39  ;;  %v3243_v36 = vadd.f32 1.0, %v2341_v29  ;;  %v3245_v35 = vpop.eup %2342  ;;  %vm1582_vm8 = vmor %vm1580_vm7, %vm1581_vm6  ;;  %v1601_v30 = vand.u32 2147483648, %v1574_v39  ;;  %v1599_v18 = vand.u32 2147483647, %v1574_v39 }
 0x3d1   :  { %v1577_v47 = vsub.f32 1.0, %v1576_v13  ;;  %v1624_v27 = vmul.f32 %v3245_v35, %v3240_v23  ;;  %vm1595_vm11 = vweird.f32 %v1574_v39  ;;  %vm1629_vm14 = vweird.f32 %v3245_v35  ;;  %v1675_v13 = vpop.permute.xlu2 %1674 }
 0x3d2   :  { %2346 = vrcp.f32 %v3243_v36  ;;  %v1602_v52 = vor.u32 1.1754944e-38, %v1601_v30  ;;  %vm1600_vm13 = vcmp.eq.f32.partialorder %v1599_v18, 8.507059e+37  ;;  %vm1630_vm0 = vmor %vm1628_vm15, %vm1629_vm14  ;;  %v1649_v5 = vand.u32 2147483648, %v3243_v36 }
 0x3d3   :  { %v1578_v7 = vmul.f32 %v2339_v19, %v1577_v47  ;;  %v1625_v0 = vsub.f32 1.0, %v1624_v27  ;;  %vm1643_vm3 = vweird.f32 %v3243_v36  ;;  %v1647_v63 = vand.u32 2147483647, %v3243_v36 }
 0x3d4   :  { %v1650_v4 = vor.u32 1.1754944e-38, %v1649_v5  ;;  %vm1680_vm6 = vcmp.eq.s32.totalorder %v1678_v24, 1  ;;  %vm1679_vm7 = vcmp.eq.s32.totalorder %v1675_v13, 1 }
 0x3d5   :  { %v1579_v54 = vadd.f32 %v2339_v19, %v1578_v7  ;;  %v1626_v42 = vmul.f32 %v3245_v35, %v1625_v0  ;;  %vm1648_vm5 = vcmp.eq.f32.partialorder %v1647_v63, 8.507059e+37 }
 0x3d6   :  { %v2345_v17 = vpop.eup %2344 }
 0x3d7   :  { %v1583_v40 = vsel %vm1582_vm8, %v2339_v19, %v1579_v54  ;;  %v1591_v46 = vmul.f32 %v2345_v17, %v1574_v39  ;;  %vm1596_vm10 = vweird.f32 %v2345_v17  ;;  %v1627_v20 = vadd.f32 %v3245_v35, %v1626_v42 }
 0x3d8   :  { %v1588_v15 = vsel %vm1585_vm9, %v1587_v28, %v1583_v40  ;;  %v2347_v49 = vpop.eup %2346  ;;  %vm1597_vm12 = vmor %vm1595_vm11, %vm1596_vm10  ;;  %v1774_v54 = vrot.slane %v1683_v45, 4 }
 0x3d9   :  { %v1655_v25 = vmul.f32 %v1653_v62, %v1588_v15  ;;  %v1592_v61 = vsub.f32 1.0, %v1591_v46  ;;  %v1639_v57 = vmul.f32 %v2347_v49, %v3243_v36  ;;  %v1631_v44 = vsel %vm1630_vm0, %v3245_v35, %v1627_v20 }
 0x3da   :  { %vm1644_vm1 = vweird.f32 %v2347_v49  ;;  %v1636_v32 = vsel %vm1633_vm2, %v1635_v3, %v1631_v44  ;;  %v1730_v35 = vunpack.c.l.bf16 %v1683_v45  ;;  %v1778_v28 = vunpack.c.l.bf16 %v1774_v54  ;;  %v1686_v45 = vld [vmem:[#allocation2 + $0x8c] sm:$0xf] }
 0x3db   :  { %v1659_v6 = vadd.f32 %v1657_v55, %v1655_v25  ;;  %v1593_v8 = vmul.f32 %v2345_v17, %v1592_v61  ;;  %v1640_v59 = vsub.f32 1.0, %v1639_v57  ;;  %vm1645_vm4 = vmor %vm1643_vm3, %vm1644_vm1  ;;  %v1731_v62 = vunpack.c.l.bf16 %v1685_v50 }
 0x3dc   :  { %v1775_v15 = vrot.slane %v1685_v50, 4 }
 0x3dd   :  { %v1594_v56 = vadd.f32 %v2345_v17, %v1593_v8  ;;  %2348 = vtanh.f32 %v1659_v6  ;;  %v1641_v21 = vmul.f32 %v2347_v49, %v1640_v59 }
 0x3de   :  { %v1779_v61 = vunpack.c.l.bf16 %v1775_v15 }
 0x3df   :  { %v1598_v1 = vsel %vm1597_vm12, %v2345_v17, %v1594_v56  ;;  %v1642_v53 = vadd.f32 %v2347_v49, %v1641_v21 }
 0x3e0   :  { %v1603_v2 = vsel %vm1600_vm13, %v1602_v52, %v1598_v1 }
 0x3e1   :  { %v1656_v11 = vmul.f32 %v1654_v60, %v1603_v2  ;;  %v1646_v26 = vsel %vm1645_vm4, %v2347_v49, %v1642_v53 }
 0x3e2   :  { %v1651_v23 = vsel %vm1648_vm5, %v1650_v4, %v1646_v26 }
 0x3e3   :  { %v2349_v33 = vpop.eup %2348  ;;  %v1660_v22 = vadd.f32 %v1658_v12, %v1656_v11 }
 0x3e4   :  { %v1663_v14 = vsub.f32 %v3233_v58, %v2349_v33 }
 0x3e5   :  { %2350 = vtanh.f32 %v1660_v22 }
 0x3e6   :  { %v1665_v31 = vmul.f32 %v1663_v14, %v1636_v32 }
 0x3e8   :  { %v1667_v39 = vadd.f32 %v2349_v33, %v1665_v31  ;;  %v1684_v33 = vld [vmem:[#allocation2 + $0x80] sm:$0xf] }
 0x3e9   :  { %v1824_v63 = vunpack.c.l.bf16 %v1684_v33 }
 0x3ea   :  { %v3271_v47 = vsel %vm1679_vm7, %v1667_v39, %v3233_v58 }
 0x3eb   :  { %v2351_v9 = vpop.eup %2350 }
 0x3ec   :  { %v1664_v16 = vsub.f32 %v3236_v43, %v2351_v9 }
 0x3ee   :  { %v1666_v19 = vmul.f32 %v1664_v16, %v1651_v23 }
 0x3f0   :  { %v1668_v29 = vadd.f32 %v2351_v9, %v1666_v19 }
 0x3f2   :  { %v3274_v36 = vsel %vm1680_vm6, %v1668_v29, %v3236_v43 }
 0x3f3   :  { %v1687_v48 = vpack.c.bf16 %v3274_v36, %v3271_v47 }
 0x3f5   :  { %1696 = vmatmul.bf16.vlgmr.msra.gmra.mxu1 %v1687_v48  ;;  %1710 = vmatmul.bf16.vlgmr.msra.gmra.mxu2 %v1687_v48 }
 0x3f6   :  { %1724 = vmatmul.bf16.vlgmr.msra.gmra.mxu3 %v1687_v48 }
 0x472   :  { %v1697_v7 = vpop.f32.mrf.mxu1 }
 0x473   :  { %v1732_v37 = vadd.f32 %v1730_v35, %v1697_v7 }
 0x475   :  { %v2177_v17 = vmul.f32 -1.442695, %v1732_v37 }
 0x477   :  { %2352 = vpow2.f32 %v2177_v17 }
 0x478   :  { %v1711_v58 = vpop.f32.mrf.mxu2 }
 0x479   :  { %v1780_v27 = vadd.f32 %v1778_v28, %v1711_v58  ;;  %v1725_v52 = vpop.f32.mrf.mxu3  ;;  %v1825_v58 = vunpack.c.l.bf16 %v1686_v45 }
 0x47a   :  { %v1699_v43 = vpop.f32.mrf.mxu1  ;;  %v1820_v53 = vadd.f32 %v3253_v38, %v1725_v52 }
 0x47b   :  { %v2179_v40 = vmul.f32 -1.442695, %v1780_v27  ;;  %v1733_v46 = vadd.f32 %v1731_v62, %v1699_v43 }
 0x47d   :  { %v2353_v49 = vpop.eup %2352  ;;  %2354 = vpow2.f32 %v2179_v40  ;;  %v2178_v25 = vmul.f32 -1.442695, %v1733_v46 }
 0x47e   :  { %v1740_v55 = vadd.f32 1.0, %v2353_v49 }
 0x47f   :  { %2356 = vpow2.f32 %v2178_v25 }
 0x480   :  { %2358 = vrcp.f32 %v1740_v55  ;;  %v1713_v0 = vpop.f32.mrf.mxu2  ;;  %v1753_v59 = vand.u32 2147483648, %v1740_v55  ;;  %v1751_v2 = vand.u32 2147483647, %v1740_v55  ;;  %vm1747_vm9 = vweird.f32 %v1740_v55 }
 0x481   :  { %v1781_v30 = vadd.f32 %v1779_v61, %v1713_v0  ;;  %v1727_v16 = vpop.f32.mrf.mxu3 }
 0x482   :  { %v1754_v34 = vor.u32 1.1754944e-38, %v1753_v59  ;;  %vm1752_vm11 = vcmp.eq.f32.partialorder %v1751_v2, 8.507059e+37  ;;  %v1821_v7 = vadd.f32 %v3253_v38, %v1727_v16  ;;  %v1842_v38 = vpop.permute.xlu1 %1841 }
 0x483   :  { %v2355_v57 = vpop.eup %2354  ;;  %v2180_v6 = vmul.f32 -1.442695, %v1781_v30  ;;  %vm1846_vm5 = vcmp.eq.s32.totalorder %v1842_v38, 1 }
 0x484   :  { %v3278_v8 = vadd.f32 1.0, %v2355_v57 }
 0x485   :  { %v2357_v18 = vpop.eup %2356  ;;  %2360 = vpow2.f32 %v2180_v6 }
 0x486   :  { %v2359_v10 = vpop.eup %2358  ;;  %2362 = vrcp.f32 %v3278_v8  ;;  %v1741_v42 = vadd.f32 1.0, %v2357_v18  ;;  %v1801_v29 = vand.u32 2147483648, %v3278_v8  ;;  %vm1795_vm0 = vweird.f32 %v3278_v8 }
 0x487   :  { %v1743_v56 = vmul.f32 %v2359_v10, %v1740_v55  ;;  %vm1748_vm8 = vweird.f32 %v2359_v10  ;;  %v1799_v37 = vand.u32 2147483647, %v3278_v8 }
 0x488   :  { %2364 = vrcp.f32 %v1741_v42  ;;  %vm1749_vm10 = vmor %vm1747_vm9, %vm1748_vm8  ;;  %v1768_v9 = vand.u32 2147483648, %v1741_v42  ;;  %v1766_v24 = vand.u32 2147483647, %v1741_v42  ;;  %vm1762_vm14 = vweird.f32 %v1741_v42 }
 0x489   :  { %v1744_v51 = vsub.f32 1.0, %v1743_v56  ;;  %v1802_v62 = vor.u32 1.1754944e-38, %v1801_v29  ;;  %vm1800_vm3 = vcmp.eq.f32.partialorder %v1799_v37, 8.507059e+37  ;;  %v1845_v56 = vpop.permute.xlu2 %1844 }
 0x48a   :  { %v1769_v35 = vor.u32 1.1754944e-38, %v1768_v9  ;;  %vm1767_vm1 = vcmp.eq.f32.partialorder %v1766_v24, 8.507059e+37  ;;  %vm1847_vm9 = vcmp.eq.s32.totalorder %v1845_v56, 1 }
 0x48b   :  { %v2361_v60 = vpop.eup %2360  ;;  %v1745_v1 = vmul.f32 %v2359_v10, %v1744_v51 }
 0x48c   :  { %v2363_v11 = vpop.eup %2362  ;;  %v3281_v12 = vadd.f32 1.0, %v2361_v60 }
 0x48d   :  { %v1791_v20 = vmul.f32 %v2363_v11, %v3278_v8  ;;  %v1746_v21 = vadd.f32 %v2359_v10, %v1745_v1  ;;  %vm1796_vm13 = vweird.f32 %v2363_v11 }
 0x48e   :  { %2366 = vrcp.f32 %v3281_v12  ;;  %v2365_v22 = vpop.eup %2364  ;;  %vm1797_vm2 = vmor %vm1795_vm0, %vm1796_vm13  ;;  %v1816_v61 = vand.u32 2147483648, %v3281_v12  ;;  %vm1810_vm6 = vweird.f32 %v3281_v12  ;;  %v1814_v0 = vand.u32 2147483647, %v3281_v12 }
 0x48f   :  { %v1792_v41 = vsub.f32 1.0, %v1791_v20  ;;  %v1750_v44 = vsel %vm1749_vm10, %v2359_v10, %v1746_v21  ;;  %v1758_v3 = vmul.f32 %v2365_v22, %v1741_v42  ;;  %vm1763_vm12 = vweird.f32 %v2365_v22 }
 0x490   :  { %v1755_v14 = vsel %vm1752_vm11, %v1754_v34, %v1750_v44  ;;  %vm1764_vm15 = vmor %vm1762_vm14, %vm1763_vm12  ;;  %v1817_v8 = vor.u32 1.1754944e-38, %v1816_v61  ;;  %vm1815_vm8 = vcmp.eq.f32.partialorder %v1814_v0, 8.507059e+37 }
 0x491   :  { %v1822_v5 = vmul.f32 %v1820_v53, %v1755_v14  ;;  %v1793_v32 = vmul.f32 %v2363_v11, %v1792_v41  ;;  %v1759_v26 = vsub.f32 1.0, %v1758_v3 }
 0x493   :  { %v1826_v31 = vadd.f32 %v1824_v63, %v1822_v5  ;;  %v1760_v23 = vmul.f32 %v2365_v22, %v1759_v26  ;;  %v1794_v39 = vadd.f32 %v2363_v11, %v1793_v32 }
 0x494   :  { %v2367_v4 = vpop.eup %2366 }
 0x495   :  { %2368 = vtanh.f32 %v1826_v31  ;;  %v1806_v19 = vmul.f32 %v2367_v4, %v3281_v12  ;;  %v1761_v13 = vadd.f32 %v2365_v22, %v1760_v23  ;;  %v1798_v50 = vsel %vm1797_vm2, %v2363_v11, %v1794_v39 }
 0x496   :  { %v1803_v15 = vsel %vm1800_vm3, %v1802_v62, %v1798_v50  ;;  %vm1811_vm4 = vweird.f32 %v2367_v4 }
 0x497   :  { %v1807_v48 = vsub.f32 1.0, %v1806_v19  ;;  %v1765_v54 = vsel %vm1764_vm15, %v2365_v22, %v1761_v13  ;;  %vm1812_vm7 = vmor %vm1810_vm6, %vm1811_vm4 }
 0x498   :  { %v1770_v17 = vsel %vm1767_vm1, %v1769_v35, %v1765_v54 }
 0x499   :  { %v1823_v28 = vmul.f32 %v1821_v7, %v1770_v17  ;;  %v1808_v43 = vmul.f32 %v2367_v4, %v1807_v48 }
 0x49b   :  { %v2369_v27 = vpop.eup %2368  ;;  %v1827_v46 = vadd.f32 %v1825_v58, %v1823_v28  ;;  %v1809_v25 = vadd.f32 %v2367_v4, %v1808_v43 }
 0x49c   :  { %v1830_v40 = vsub.f32 %v3271_v47, %v2369_v27 }
 0x49d   :  { %2370 = vtanh.f32 %v1827_v46  ;;  %v1813_v57 = vsel %vm1812_vm7, %v2367_v4, %v1809_v25 }
 0x49e   :  { %v1832_v49 = vmul.f32 %v1830_v40, %v1803_v15  ;;  %v1818_v10 = vsel %vm1815_vm8, %v1817_v8, %v1813_v57 }
 0x4a0   :  { %v1834_v55 = vadd.f32 %v2369_v27, %v1832_v49 }
 0x4a2   :  { %v1848_v30 = vsel %vm1846_vm5, %v1834_v55, %v3271_v47 }
 0x4a3   :  { %1850 = vst [vmem:[%s3310_s6] sm:$0xff] %v1848_v30  ;;  %v2371_v6 = vpop.eup %2370 }
 0x4a4   :  { %v1831_v18 = vsub.f32 %v3274_v36, %v2371_v6 }
 0x4a6   :  { %v1833_v42 = vmul.f32 %v1831_v18, %v1818_v10 }
 0x4a8   :  { %v1835_v51 = vadd.f32 %v2371_v6, %v1833_v42 }
 0x4aa   :  { %v1849_v52 = vsel %vm1847_vm9, %v1835_v51, %v3274_v36 }
 0x4ab   :  { %1851 = vst [vmem:[%s3310_s6 + $0x8] sm:$0xff] %v1849_v52 }

</bundles_post_ra>
